<compile_context>
chip_gen: v7x
topology: tpu7x:2x2x1
jax: 0.10.0
libtpu: 0.0.40
codegen_flags: <defaults>
</compile_context>

<pallas_src>
import functools

import jax
import jax.numpy as jnp
from jax.experimental import pallas as pl
from jax.experimental.pallas import tpu as pltpu

NEG_SLOPE = 0.01  # nn.LeakyReLU() default negative_slope


def _leaky_relu(x):
    # Equivalent to leaky_relu for 0 < slope < 1: mul + max only (VPU-friendly).
    return jnp.maximum(x, NEG_SLOPE * x)


def briney_kernel(x_ref,
                  w1_ref, b1_ref,
                  w2_ref, b2_ref,
                  w3_ref, b3_ref,
                  w4_ref, b4_ref,
                  o_ref):
    # Entire 4-layer MLP + exp fused: matmuls on the MXU (f32 accumulation even
    # for bf16 inputs), activations on the VPU, exp on the EUP. One batch tile
    # plus all weights stay resident in VMEM.
    h = jnp.dot(x_ref[...], w1_ref[...], preferred_element_type=jnp.float32)
    h = _leaky_relu(h + b1_ref[...])

    h = jnp.dot(h, w2_ref[...], preferred_element_type=jnp.float32)
    h = _leaky_relu(h + b2_ref[...])

    h = jnp.dot(h, w3_ref[...], preferred_element_type=jnp.float32)
    h = _leaky_relu(h + b3_ref[...])

    # Final Linear has NO activation after it in the Sequential; exp directly.
    h = jnp.dot(h, w4_ref[...], preferred_element_type=jnp.float32) + b4_ref[...]
    o_ref[...] = jnp.exp(h).astype(o_ref.dtype)


@functools.partial(jax.jit, static_argnames=("batch_tile", "use_bf16_input"))
def briney_predictor(x, params, batch_tile=1024, use_bf16_input=True):
    """x: (B, input_dim) float32. Returns squeeze(exp(MLP(x))) -> (B,)."""
    (w1, b1), (w2, b2), (w3, b3), (w4, b4) = params
    B, D = x.shape
    m1, m2, m3, m4 = w1.shape[1], w2.shape[1], w3.shape[1], w4.shape[1]

    # Pad the batch up to a multiple of the tile (instead of asserting).
    Bp = pl.cdiv(B, batch_tile) * batch_tile
    if Bp != B:
        x = jnp.pad(x, ((0, Bp - B), (0, 0)))

    if use_bf16_input:
        # Halve HBM traffic for the dominant x stream; w1 rides along (tiny).
        x = x.astype(jnp.bfloat16)
        w1 = w1.astype(jnp.bfloat16)

    grid = (Bp // batch_tile,)

    def resident(a):
        # Same full block at every grid step -> fetched once, stays in VMEM.
        nd = a.ndim
        return pl.BlockSpec(a.shape, lambda i, _nd=nd: (0,) * _nd)

    flops = 2 * Bp * (D * m1 + m1 * m2 + m2 * m3 + m3 * m4)
    param_bytes = sum(int(a.size) * a.dtype.itemsize
                      for a in (w1, b1, w2, b2, w3, b3, w4, b4))
    bytes_accessed = Bp * D * x.dtype.itemsize + param_bytes + Bp * 4

    out = pl.pallas_call(
        briney_kernel,
        out_shape=jax.ShapeDtypeStruct((Bp, 1), jnp.float32),
        grid_spec=pltpu.PrefetchScalarGridSpec(
            num_scalar_prefetch=0,
            grid=grid,
            in_specs=[
                pl.BlockSpec((batch_tile, D), lambda i: (i, 0)),  # x tile
                resident(w1), resident(b1),
                resident(w2), resident(b2),
                resident(w3), resident(b3),
                resident(w4), resident(b4),
            ],
            out_specs=pl.BlockSpec((batch_tile, 1), lambda i: (i, 0)),
        ),
        compiler_params=pltpu.CompilerParams(
            dimension_semantics=("parallel",)),
        cost_estimate=pl.CostEstimate(
            flops=flops, transcendentals=Bp, bytes_accessed=bytes_accessed),
    )(x, w1, b1, w2, b2, w3, b3, w4, b4)

    # torch.squeeze(exp(x)) on shape (B, 1) -> (B,)
    return jnp.squeeze(out[:B], axis=-1)


def init_params(key, input_dim=512, mid_dim1=128, mid_dim2=32, mid_dim3=8):
    """Deterministic init mimicking PyTorch nn.Linear default U(-1/sqrt(fan_in), +)."""
    dims = [(input_dim, mid_dim1), (mid_dim1, mid_dim2),
            (mid_dim2, mid_dim3), (mid_dim3, 1)]
    params = []
    for (fan_in, fan_out) in dims:
        key, kw, kb = jax.random.split(key, 3)
        bound = 1.0 / jnp.sqrt(jnp.float32(fan_in))
        w = jax.random.uniform(kw, (fan_in, fan_out), jnp.float32, -bound, bound)
        b = jax.random.uniform(kb, (1, fan_out), jnp.float32, -bound, bound)
        params.append((w, b))
    return params


def reference_forward(x, params):
    """Pure-JAX reference matching the PyTorch module semantics."""
    h = x
    for idx, (w, b) in enumerate(params):
        h = h @ w + b
        if idx < len(params) - 1:
            h = jnp.where(h > 0, h, NEG_SLOPE * h)
    return jnp.squeeze(jnp.exp(h))


if __name__ == "__main__":
    key = jax.random.PRNGKey(0)
    k_params, k_x = jax.random.split(key)

    input_dim = 512  # module default
    batch = 8        # small batch (padded internally to the batch tile)

    params = init_params(k_params, input_dim=input_dim)
    x = jax.random.normal(k_x, (batch, input_dim), jnp.float32)

    # --- fp32 path: tight check against the pure-JAX reference --------------
    y32 = jax.block_until_ready(
        briney_predictor(x, params, batch_tile=256, use_bf16_input=False))
    ref32 = reference_forward(x, params)
    assert y32.shape == (batch,), y32.shape
    assert jnp.allclose(y32, ref32, rtol=2e-3, atol=2e-3), (y32, ref32)

    # --- bf16-input fast path (default config) ------------------------------
    ybf = jax.block_until_ready(briney_predictor(x, params))
    params_q = [((w.astype(jnp.bfloat16).astype(jnp.float32) if i == 0 else w), b)
                for i, (w, b) in enumerate(params)]
    refq = reference_forward(x.astype(jnp.bfloat16).astype(jnp.float32), params_q)
    assert ybf.shape == (batch,), ybf.shape
    assert jnp.allclose(ybf, refq, rtol=5e-3, atol=5e-3), (ybf, refq)
    assert jnp.allclose(ybf, ref32, rtol=5e-2, atol=5e-2), (ybf, ref32)

    # --- multi-tile grid: exercises pipelining / megacore sharding ----------
    xb = jax.random.normal(jax.random.PRNGKey(1), (2048, input_dim), jnp.float32)
    yb = jax.block_until_ready(briney_predictor(xb, params, batch_tile=1024))
    refb = reference_forward(xb.astype(jnp.bfloat16).astype(jnp.float32), params_q)
    assert yb.shape == (2048,), yb.shape
    assert jnp.allclose(yb, refb, rtol=5e-3, atol=5e-3)

    print("KERNEL_OK")
</pallas_src>

<mosaic_0001>
module attributes {stable_mosaic.version = 11 : i64} {
  func.func @briney_kernel(%arg0: i32, %arg1: memref<256x512xf32, #tpu.memory_space<vmem>>, %arg2: memref<512x128xf32, #tpu.memory_space<vmem>>, %arg3: memref<1x128xf32, #tpu.memory_space<vmem>>, %arg4: memref<128x32xf32, #tpu.memory_space<vmem>>, %arg5: memref<1x32xf32, #tpu.memory_space<vmem>>, %arg6: memref<32x8xf32, #tpu.memory_space<vmem>>, %arg7: memref<1x8xf32, #tpu.memory_space<vmem>>, %arg8: memref<8x1xf32, #tpu.memory_space<vmem>>, %arg9: memref<1x1xf32, #tpu.memory_space<vmem>>, %arg10: memref<256x1xf32, #tpu.memory_space<vmem>>) attributes {dimension_semantics = [#tpu.dimension_semantics<parallel>], iteration_bounds = array<i64: 1>, scalar_prefetch = 0 : i64, scratch_operands = 0 : i64, tpu.core_type = #tpu.core_type<tc>, window_params = [{transform_indices = @transform_0, window_bounds = array<i64: 256, 512>}, {pipeline_mode = #tpu.pipeline_mode<synchronous>, transform_indices = @transform_1, window_bounds = array<i64: 512, 128>}, {pipeline_mode = #tpu.pipeline_mode<synchronous>, transform_indices = @transform_2, window_bounds = array<i64: 1, 128>}, {pipeline_mode = #tpu.pipeline_mode<synchronous>, transform_indices = @transform_3, window_bounds = array<i64: 128, 32>}, {pipeline_mode = #tpu.pipeline_mode<synchronous>, transform_indices = @transform_4, window_bounds = array<i64: 1, 32>}, {pipeline_mode = #tpu.pipeline_mode<synchronous>, transform_indices = @transform_5, window_bounds = array<i64: 32, 8>}, {pipeline_mode = #tpu.pipeline_mode<synchronous>, transform_indices = @transform_6, window_bounds = array<i64: 1, 8>}, {pipeline_mode = #tpu.pipeline_mode<synchronous>, transform_indices = @transform_7, window_bounds = array<i64: 8, 1>}, {pipeline_mode = #tpu.pipeline_mode<synchronous>, transform_indices = @transform_8, window_bounds = array<i64: 1, 1>}, {transform_indices = @transform_9, window_bounds = array<i64: 256, 1>}]} {
    %c0 = arith.constant 0 : index
    %c0_0 = arith.constant 0 : index
    %0 = vector.load %arg1[%c0, %c0_0] : memref<256x512xf32, #tpu.memory_space<vmem>>, vector<256x512xf32>
    %c0_1 = arith.constant 0 : index
    %c0_2 = arith.constant 0 : index
    %1 = vector.load %arg2[%c0_1, %c0_2] : memref<512x128xf32, #tpu.memory_space<vmem>>, vector<512x128xf32>
    %cst = arith.constant dense<0.000000e+00> : vector<256x128xf32>
    %2 = tpu.matmul %0, %1, %cst {dimension_numbers = #tpu.dot_dimension_numbers<[1], [0], [0], [1], [0, 0, 1, 1], [], []>} : vector<256x512xf32>, vector<512x128xf32>, vector<256x128xf32> -> vector<256x128xf32>
    %c0_3 = arith.constant 0 : index
    %c0_4 = arith.constant 0 : index
    %3 = vector.load %arg3[%c0_3, %c0_4] : memref<1x128xf32, #tpu.memory_space<vmem>>, vector<1x128xf32>
    %4 = vector.broadcast %3 : vector<1x128xf32> to vector<256x128xf32>
    %5 = arith.addf %2, %4 : vector<256x128xf32>
    %cst_5 = arith.constant 0.00999999977 : f32
    %6 = vector.broadcast %cst_5 : f32 to vector<256x128xf32>
    %7 = arith.mulf %6, %5 : vector<256x128xf32>
    %8 = arith.maximumf %5, %7 : vector<256x128xf32>
    %c0_6 = arith.constant 0 : index
    %c0_7 = arith.constant 0 : index
    %9 = vector.load %arg4[%c0_6, %c0_7] : memref<128x32xf32, #tpu.memory_space<vmem>>, vector<128x32xf32>
    %cst_8 = arith.constant dense<0.000000e+00> : vector<256x32xf32>
    %10 = tpu.matmul %8, %9, %cst_8 {dimension_numbers = #tpu.dot_dimension_numbers<[1], [0], [0], [1], [0, 0, 1, 1], [], []>} : vector<256x128xf32>, vector<128x32xf32>, vector<256x32xf32> -> vector<256x32xf32>
    %c0_9 = arith.constant 0 : index
    %c0_10 = arith.constant 0 : index
    %11 = vector.load %arg5[%c0_9, %c0_10] : memref<1x32xf32, #tpu.memory_space<vmem>>, vector<1x32xf32>
    %12 = vector.broadcast %11 : vector<1x32xf32> to vector<256x32xf32>
    %13 = arith.addf %10, %12 : vector<256x32xf32>
    %cst_11 = arith.constant 0.00999999977 : f32
    %14 = vector.broadcast %cst_11 : f32 to vector<256x32xf32>
    %15 = arith.mulf %14, %13 : vector<256x32xf32>
    %16 = arith.maximumf %13, %15 : vector<256x32xf32>
    %c0_12 = arith.constant 0 : index
    %c0_13 = arith.constant 0 : index
    %17 = vector.load %arg6[%c0_12, %c0_13] : memref<32x8xf32, #tpu.memory_space<vmem>>, vector<32x8xf32>
    %cst_14 = arith.constant dense<0.000000e+00> : vector<256x8xf32>
    %18 = tpu.matmul %16, %17, %cst_14 {dimension_numbers = #tpu.dot_dimension_numbers<[1], [0], [0], [1], [0, 0, 1, 1], [], []>} : vector<256x32xf32>, vector<32x8xf32>, vector<256x8xf32> -> vector<256x8xf32>
    %c0_15 = arith.constant 0 : index
    %c0_16 = arith.constant 0 : index
    %19 = vector.load %arg7[%c0_15, %c0_16] : memref<1x8xf32, #tpu.memory_space<vmem>>, vector<1x8xf32>
    %20 = vector.broadcast %19 : vector<1x8xf32> to vector<256x8xf32>
    %21 = arith.addf %18, %20 : vector<256x8xf32>
    %cst_17 = arith.constant 0.00999999977 : f32
    %22 = vector.broadcast %cst_17 : f32 to vector<256x8xf32>
    %23 = arith.mulf %22, %21 : vector<256x8xf32>
    %24 = arith.maximumf %21, %23 : vector<256x8xf32>
    %c0_18 = arith.constant 0 : index
    %c0_19 = arith.constant 0 : index
    %25 = vector.load %arg8[%c0_18, %c0_19] : memref<8x1xf32, #tpu.memory_space<vmem>>, vector<8x1xf32>
    %cst_20 = arith.constant dense<0.000000e+00> : vector<256x1xf32>
    %26 = tpu.matmul %24, %25, %cst_20 {dimension_numbers = #tpu.dot_dimension_numbers<[1], [0], [0], [1], [0, 0, 1, 1], [], []>} : vector<256x8xf32>, vector<8x1xf32>, vector<256x1xf32> -> vector<256x1xf32>
    %c0_21 = arith.constant 0 : index
    %c0_22 = arith.constant 0 : index
    %27 = vector.load %arg9[%c0_21, %c0_22] : memref<1x1xf32, #tpu.memory_space<vmem>>, vector<1x1xf32>
    %28 = vector.broadcast %27 : vector<1x1xf32> to vector<256x1xf32>
    %29 = arith.addf %26, %28 : vector<256x1xf32>
    %30 = math.exp %29 : vector<256x1xf32>
    %c0_23 = arith.constant 0 : index
    %c0_24 = arith.constant 0 : index
    %31 = vector.load %arg10[%c0_23, %c0_24] : memref<256x1xf32, #tpu.memory_space<vmem>>, vector<256x1xf32>
    tpu.vector_store %arg10[%c0_23, %c0_24], %30 {strides = array<i32>} : memref<256x1xf32, #tpu.memory_space<vmem>>, vector<256x1xf32>,
    return
  }
  func.func @transform_0(%arg0: i32) -> (i32, i32) {
    %c0_i32 = arith.constant 0 : i32
    %c0_i32_0 = arith.constant 0 : i32
    return %arg0, %c0_i32 : i32, i32
  }
  func.func @transform_1(%arg0: i32) -> (i32, i32) {
    %c0_i32 = arith.constant 0 : i32
    %c0_i32_0 = arith.constant 0 : i32
    %c0_i32_1 = arith.constant 0 : i32
    return %c0_i32, %c0_i32_0 : i32, i32
  }
  func.func @transform_2(%arg0: i32) -> (i32, i32) {
    %c0_i32 = arith.constant 0 : i32
    %c0_i32_0 = arith.constant 0 : i32
    %c0_i32_1 = arith.constant 0 : i32
    return %c0_i32, %c0_i32_0 : i32, i32
  }
  func.func @transform_3(%arg0: i32) -> (i32, i32) {
    %c0_i32 = arith.constant 0 : i32
    %c0_i32_0 = arith.constant 0 : i32
    %c0_i32_1 = arith.constant 0 : i32
    return %c0_i32, %c0_i32_0 : i32, i32
  }
  func.func @transform_4(%arg0: i32) -> (i32, i32) {
    %c0_i32 = arith.constant 0 : i32
    %c0_i32_0 = arith.constant 0 : i32
    %c0_i32_1 = arith.constant 0 : i32
    return %c0_i32, %c0_i32_0 : i32, i32
  }
  func.func @transform_5(%arg0: i32) -> (i32, i32) {
    %c0_i32 = arith.constant 0 : i32
    %c0_i32_0 = arith.constant 0 : i32
    %c0_i32_1 = arith.constant 0 : i32
    return %c0_i32, %c0_i32_0 : i32, i32
  }
  func.func @transform_6(%arg0: i32) -> (i32, i32) {
    %c0_i32 = arith.constant 0 : i32
    %c0_i32_0 = arith.constant 0 : i32
    %c0_i32_1 = arith.constant 0 : i32
    return %c0_i32, %c0_i32_0 : i32, i32
  }
  func.func @transform_7(%arg0: i32) -> (i32, i32) {
    %c0_i32 = arith.constant 0 : i32
    %c0_i32_0 = arith.constant 0 : i32
    %c0_i32_1 = arith.constant 0 : i32
    return %c0_i32, %c0_i32_0 : i32, i32
  }
  func.func @transform_8(%arg0: i32) -> (i32, i32) {
    %c0_i32 = arith.constant 0 : i32
    %c0_i32_0 = arith.constant 0 : i32
    %c0_i32_1 = arith.constant 0 : i32
    return %c0_i32, %c0_i32_0 : i32, i32
  }
  func.func @transform_9(%arg0: i32) -> (i32, i32) {
    %c0_i32 = arith.constant 0 : i32
    %c0_i32_0 = arith.constant 0 : i32
    return %arg0, %c0_i32 : i32, i32
  }
}

</mosaic_0001>

<bundles_post_ra>
// kernel: briney_predictor.1
= control target key start
LH: loop header
LB: loop body
LE: loop exit
PB: predicated region body
PF: predicated region fallthrough
CT: control target
= control target key end

     0   :  { %v2579_v0 = vmov 0.0|0.0   ;;  %vm1070_vm0 = vcmask 261120   ;;  %vm1464_vm1 = vcmask 64512   ;;  %vm1850_vm2 = vcmask 7168   ;;  %s3681_s1 = inlined_call_operand.vmem [shape: f32[512,128], index: 1, kind: input, shape index: {}]   ;;  %s3682_s0 = inlined_call_operand.vmem [shape: f32[256,512], index: 0, kind: input, shape index: {}]   ;;  %s3683_s3 = inlined_call_operand.vmem [shape: f32[128,32], index: 3, kind: input, shape index: {}]   ;;  %s3684_s2 = inlined_call_operand.vmem [shape: f32[1,128], index: 2, kind: input, shape index: {}]   ;;  %s3685_s5 = inlined_call_operand.vmem [shape: f32[32,8], index: 5, kind: input, shape index: {}]   ;;  %s3686_s4 = inlined_call_operand.vmem [shape: f32[1,32], index: 4, kind: input, shape index: {}]   ;;  %s3687_s7 = inlined_call_operand.vmem [shape: f32[8,1], index: 7, kind: input, shape index: {}]   ;;  %s3688_s6 = inlined_call_operand.vmem [shape: f32[1,8], index: 6, kind: input, shape index: {}]   ;;  %s3689_s8 = inlined_call_operand.<no memory space> [shape: f32[1,1], index: 8, kind: input, shape index: {}]   ;;  %s3690_s9 = inlined_call_operand.vmem [shape: f32[256,1], index: 9, kind: output, shape index: {}]  }
   0x1   :  { %2258 = vmatprep.subr.bf16.mxu0 %v2579_v0  ;;  %v162_v1 = vld [vmem:[%s3681_s1] sm:$0xff]  ;;  %v163_v2 = vld [vmem:[%s3681_s1 + $0x8] sm:$0xff]  ;;  %v164_v3 = vld [vmem:[%s3681_s1 + $0x10] sm:$0xff]  ;;  %2394 = vmatprep.subr.bf16.mxu1 %v2579_v0 }
   0x2   :  { %v2259_v4 = vpack.c.bf16 %v163_v2, %v162_v1  ;;  %v165_v5 = vld [vmem:[%s3681_s1 + $0x18] sm:$0xff]  ;;  %v166_v7 = vld [vmem:[%s3681_s1 + $0x20] sm:$0xff]  ;;  %v167_v8 = vld [vmem:[%s3681_s1 + $0x28] sm:$0xff] }
   0x3   :  { %v2262_v6 = vpack.c.bf16 %v165_v5, %v164_v3  ;;  %v2265_v9 = vpack.c.bf16 %v167_v8, %v166_v7  ;;  %v168_v10 = vld [vmem:[%s3681_s1 + $0x30] sm:$0xff]  ;;  %v169_v11 = vld [vmem:[%s3681_s1 + $0x38] sm:$0xff]  ;;  %v35_v12 = vld [vmem:[%s3682_s0 + $0x8] sm:$0xff] }
   0x4   :  { %2260 = vmatpush1.bf16.msra.mxu0 %v2259_v4  ;;  %2410 = vmatpush1.bf16.msra.mxu1 %v2259_v4  ;;  %v2268_v13 = vpack.c.bf16 %v169_v11, %v168_v10  ;;  %v170_v14 = vld [vmem:[%s3681_s1 + $0x40] sm:$0xff]  ;;  %v171_v15 = vld [vmem:[%s3681_s1 + $0x48] sm:$0xff]  ;;  %v172_v17 = vld [vmem:[%s3681_s1 + $0x50] sm:$0xff] }
   0x5   :  { %2261 = vmatprep.subr.bf16.mxu0 %v2579_v0  ;;  %2395 = vmatprep.subr.bf16.mxu1 %v2579_v0  ;;  %v2271_v16 = vpack.c.bf16 %v171_v15, %v170_v14  ;;  %v173_v18 = vld [vmem:[%s3681_s1 + $0x58] sm:$0xff]  ;;  %v174_v20 = vld [vmem:[%s3681_s1 + $0x60] sm:$0xff]  ;;  %v175_v21 = vld [vmem:[%s3681_s1 + $0x68] sm:$0xff] }
   0x6   :  { %297 = vmatprep.mubr.f32.mxu0 %v35_v12  ;;  %v2274_v19 = vpack.c.bf16 %v173_v18, %v172_v17  ;;  %v2277_v22 = vpack.c.bf16 %v175_v21, %v174_v20  ;;  %v176_v23 = vld [vmem:[%s3681_s1 + $0x70] sm:$0xff]  ;;  %v177_v24 = vld [vmem:[%s3681_s1 + $0x78] sm:$0xff]  ;;  %v178_v26 = vld [vmem:[%s3681_s1 + $0x80] sm:$0xff] }
   0x7   :  { %v2280_v25 = vpack.c.bf16 %v177_v24, %v176_v23  ;;  %v179_v27 = vld [vmem:[%s3681_s1 + $0x88] sm:$0xff]  ;;  %v180_v29 = vld [vmem:[%s3681_s1 + $0x90] sm:$0xff]  ;;  %v181_v30 = vld [vmem:[%s3681_s1 + $0x98] sm:$0xff] }
   0x8   :  { %2263 = vmatpush1.bf16.msra.mxu0 %v2262_v6  ;;  %2411 = vmatpush1.bf16.msra.mxu1 %v2262_v6  ;;  %v2283_v28 = vpack.c.bf16 %v179_v27, %v178_v26  ;;  %v2286_v31 = vpack.c.bf16 %v181_v30, %v180_v29  ;;  %v182_v32 = vld [vmem:[%s3681_s1 + $0xa0] sm:$0xff]  ;;  %v183_v33 = vld [vmem:[%s3681_s1 + $0xa8] sm:$0xff]  ;;  %v184_v35 = vld [vmem:[%s3681_s1 + $0xb0] sm:$0xff] }
   0x9   :  { %2264 = vmatprep.subr.bf16.mxu0 %v2579_v0  ;;  %2396 = vmatprep.subr.bf16.mxu1 %v2579_v0  ;;  %v2289_v34 = vpack.c.bf16 %v183_v33, %v182_v32  ;;  %v185_v36 = vld [vmem:[%s3681_s1 + $0xb8] sm:$0xff]  ;;  %v186_v38 = vld [vmem:[%s3681_s1 + $0xc0] sm:$0xff]  ;;  %v187_v39 = vld [vmem:[%s3681_s1 + $0xc8] sm:$0xff] }
   0xa   :  { %v2292_v37 = vpack.c.bf16 %v185_v36, %v184_v35  ;;  %v2295_v40 = vpack.c.bf16 %v187_v39, %v186_v38  ;;  %v188_v41 = vld [vmem:[%s3681_s1 + $0xd0] sm:$0xff]  ;;  %v189_v42 = vld [vmem:[%s3681_s1 + $0xd8] sm:$0xff]  ;;  %v190_v44 = vld [vmem:[%s3681_s1 + $0xe0] sm:$0xff] }
   0xb   :  { %v2298_v43 = vpack.c.bf16 %v189_v42, %v188_v41  ;;  %v191_v45 = vld [vmem:[%s3681_s1 + $0xe8] sm:$0xff]  ;;  %v192_v47 = vld [vmem:[%s3681_s1 + $0xf0] sm:$0xff]  ;;  %v193_v48 = vld [vmem:[%s3681_s1 + $0xf8] sm:$0xff] }
   0xc   :  { %2266 = vmatpush1.bf16.msra.mxu0 %v2265_v9  ;;  %2412 = vmatpush1.bf16.msra.mxu1 %v2265_v9  ;;  %v2301_v46 = vpack.c.bf16 %v191_v45, %v190_v44  ;;  %v2304_v49 = vpack.c.bf16 %v193_v48, %v192_v47  ;;  %v194_v50 = vld [vmem:[%s3681_s1 + $0x100] sm:$0xff]  ;;  %v195_v51 = vld [vmem:[%s3681_s1 + $0x108] sm:$0xff]  ;;  %v196_v55 = vld [vmem:[%s3681_s1 + $0x110] sm:$0xff] }
   0xd   :  { %2267 = vmatprep.subr.bf16.mxu0 %v2579_v0  ;;  %2397 = vmatprep.subr.bf16.mxu1 %v2579_v0  ;;  %v34_v52 = vld [vmem:[%s3682_s0] sm:$0xff]  ;;  %v2307_v53 = vpack.c.bf16 %v195_v51, %v194_v50  ;;  %v39_v54 = vld [vmem:[%s3682_s0 + $0x28] sm:$0xff]  ;;  %v197_v56 = vld [vmem:[%s3681_s1 + $0x118] sm:$0xff] }
   0xe   :  { %v38_v57 = vld [vmem:[%s3682_s0 + $0x20] sm:$0xff]  ;;  %v2310_v58 = vpack.c.bf16 %v197_v56, %v196_v55  ;;  %v43_v59 = vld [vmem:[%s3682_s0 + $0x48] sm:$0xff]  ;;  %v200_v2 = vld [vmem:[%s3681_s1 + $0x130] sm:$0xff] }
   0xf   :  { %v198_v60 = vld [vmem:[%s3681_s1 + $0x120] sm:$0xff]  ;;  %v199_v61 = vld [vmem:[%s3681_s1 + $0x128] sm:$0xff]  ;;  %v201_v3 = vld [vmem:[%s3681_s1 + $0x138] sm:$0xff] }
  0x10   :  { %2269 = vmatpush1.bf16.msra.mxu0 %v2268_v13  ;;  %2413 = vmatpush1.bf16.msra.mxu1 %v2268_v13  ;;  %v42_v62 = vld [vmem:[%s3682_s0 + $0x40] sm:$0xff]  ;;  %v2313_v63 = vpack.c.bf16 %v199_v61, %v198_v60  ;;  %v47_v1 = vld [vmem:[%s3682_s0 + $0x68] sm:$0xff]  ;;  %v2316_v5 = vpack.c.bf16 %v201_v3, %v200_v2  ;;  %v204_v12 = vld [vmem:[%s3681_s1 + $0x150] sm:$0xff] }
  0x11   :  { %2270 = vmatprep.subr.bf16.mxu0 %v2579_v0  ;;  %2398 = vmatprep.subr.bf16.mxu1 %v2579_v0  ;;  %v46_v4 = vld [vmem:[%s3682_s0 + $0x60] sm:$0xff]  ;;  %v51_v6 = vld [vmem:[%s3682_s0 + $0x88] sm:$0xff]  ;;  %v205_v13 = vld [vmem:[%s3681_s1 + $0x158] sm:$0xff] }
  0x12   :  { %v202_v7 = vld [vmem:[%s3681_s1 + $0x140] sm:$0xff]  ;;  %v203_v8 = vld [vmem:[%s3681_s1 + $0x148] sm:$0xff]  ;;  %v2322_v15 = vpack.c.bf16 %v205_v13, %v204_v12  ;;  %v209_v23 = vld [vmem:[%s3681_s1 + $0x178] sm:$0xff] }
  0x13   :  { %v50_v9 = vld [vmem:[%s3682_s0 + $0x80] sm:$0xff]  ;;  %v2319_v10 = vpack.c.bf16 %v203_v8, %v202_v7  ;;  %v55_v11 = vld [vmem:[%s3682_s0 + $0xa8] sm:$0xff]  ;;  %v212_v32 = vld [vmem:[%s3681_s1 + $0x190] sm:$0xff] }
  0x14   :  { %2272 = vmatpush1.bf16.msra.mxu0 %v2271_v16  ;;  %2414 = vmatpush1.bf16.msra.mxu1 %v2271_v16  ;;  %v54_v14 = vld [vmem:[%s3682_s0 + $0xa0] sm:$0xff]  ;;  %v59_v16 = vld [vmem:[%s3682_s0 + $0xc8] sm:$0xff]  ;;  %v213_v33 = vld [vmem:[%s3681_s1 + $0x198] sm:$0xff] }
  0x15   :  { %2273 = vmatprep.subr.bf16.mxu0 %v2579_v0  ;;  %2399 = vmatprep.subr.bf16.mxu1 %v2579_v0  ;;  %v206_v17 = vld [vmem:[%s3681_s1 + $0x160] sm:$0xff]  ;;  %v207_v18 = vld [vmem:[%s3681_s1 + $0x168] sm:$0xff]  ;;  %v2334_v35 = vpack.c.bf16 %v213_v33, %v212_v32  ;;  %v216_v42 = vld [vmem:[%s3681_s1 + $0x1b0] sm:$0xff] }
  0x16   :  { %v2325_v20 = vpack.c.bf16 %v207_v18, %v206_v17  ;;  %v63_v21 = vld [vmem:[%s3682_s0 + $0xe8] sm:$0xff]  ;;  %v62_v24 = vld [vmem:[%s3682_s0 + $0xe0] sm:$0xff] }
  0x17   :  { %v67_v26 = vld [vmem:[%s3682_s0 + $0x108] sm:$0xff]  ;;  %v210_v27 = vld [vmem:[%s3681_s1 + $0x180] sm:$0xff] }
  0x18   :  { %2275 = vmatpush1.bf16.msra.mxu0 %v2274_v19  ;;  %2415 = vmatpush1.bf16.msra.mxu1 %v2274_v19  ;;  %v58_v19 = vld [vmem:[%s3682_s0 + $0xc0] sm:$0xff]  ;;  %v75_v36 = vld [vmem:[%s3682_s0 + $0x148] sm:$0xff] }
  0x19   :  { %2276 = vmatprep.subr.bf16.mxu0 %v2579_v0  ;;  %2400 = vmatprep.subr.bf16.mxu1 %v2579_v0  ;;  %v66_v29 = vld [vmem:[%s3682_s0 + $0x100] sm:$0xff]  ;;  %v215_v38 = vld [vmem:[%s3681_s1 + $0x1a8] sm:$0xff] }
  0x1a   :  { %v74_v39 = vld [vmem:[%s3682_s0 + $0x140] sm:$0xff]  ;;  %v79_v41 = vld [vmem:[%s3682_s0 + $0x168] sm:$0xff] }
  0x1b   :  { %v78_v44 = vld [vmem:[%s3682_s0 + $0x160] sm:$0xff]  ;;  %v219_v48 = vld [vmem:[%s3681_s1 + $0x1c8] sm:$0xff] }
  0x1c   :  { %2278 = vmatpush1.bf16.msra.mxu0 %v2277_v22  ;;  %2416 = vmatpush1.bf16.msra.mxu1 %v2277_v22  ;;  %v208_v22 = vld [vmem:[%s3681_s1 + $0x170] sm:$0xff]  ;;  %v218_v47 = vld [vmem:[%s3681_s1 + $0x1c0] sm:$0xff]  ;;  %v87_v51 = vld [vmem:[%s3682_s0 + $0x1a8] sm:$0xff] }
  0x1d   :  { %2279 = vmatprep.subr.bf16.mxu0 %v2579_v0  ;;  %2401 = vmatprep.subr.bf16.mxu1 %v2579_v0  ;;  %v2343_v50 = vpack.c.bf16 %v219_v48, %v218_v47  ;;  %v91_v56 = vld [vmem:[%s3682_s0 + $0x1c8] sm:$0xff]  ;;  %v134_v8 = vld [vmem:[%s3682_s0 + $0x320] sm:$0xff]  ;;  %v753_v48 = vld [vmem:[%s3683_s3 + $0x30] sm:$0xff] }
  0x1e   :  { %v95_v61 = vld [vmem:[%s3682_s0 + $0x1e8] sm:$0xff]  ;;  %v138_v12 = vld [vmem:[%s3682_s0 + $0x340] sm:$0xff] }
  0x1f   :  { %v99_v3 = vld [vmem:[%s3682_s0 + $0x208] sm:$0xff]  ;;  %v106_v13 = vld [vmem:[%s3682_s0 + $0x240] sm:$0xff] }
  0x20   :  { %2281 = vmatpush1.bf16.msra.mxu0 %v2280_v25  ;;  %2417 = vmatpush1.bf16.msra.mxu1 %v2280_v25  ;;  %v2328_v25 = vpack.c.bf16 %v209_v23, %v208_v22  ;;  %v135_v7 = vld [vmem:[%s3682_s0 + $0x328] sm:$0xff]  ;;  %v110_v17 = vld [vmem:[%s3682_s0 + $0x260] sm:$0xff] }
  0x21   :  { %2282 = vmatprep.subr.bf16.mxu0 %v2579_v0  ;;  %2402 = vmatprep.subr.bf16.mxu1 %v2579_v0  ;;  %v115_v18 = vld [vmem:[%s3682_s0 + $0x288] sm:$0xff]  ;;  %v158_v32 = vld [vmem:[%s3682_s0 + $0x3e0] sm:$0xff] }
  0x22   :  { %v119_v22 = vld [vmem:[%s3682_s0 + $0x2a8] sm:$0xff]  ;;  %v126_v33 = vld [vmem:[%s3682_s0 + $0x2e0] sm:$0xff] }
  0x23   :  { %v151_v23 = vld [vmem:[%s3682_s0 + $0x3a8] sm:$0xff] }
  0x24   :  { %2284 = vmatpush1.bf16.msra.mxu0 %v2283_v28  ;;  %2418 = vmatpush1.bf16.msra.mxu1 %v2283_v28  ;;  %v211_v28 = vld [vmem:[%s3681_s1 + $0x188] sm:$0xff] }
  0x25   :  { %2285 = vmatprep.subr.bf16.mxu0 %v2579_v0  ;;  %2403 = vmatprep.subr.bf16.mxu1 %v2579_v0  ;;  %v2331_v30 = vpack.c.bf16 %v211_v28, %v210_v27  ;;  %v155_v27 = vld [vmem:[%s3682_s0 + $0x3c8] sm:$0xff]  ;;  %v154_v28 = vld [vmem:[%s3682_s0 + $0x3c0] sm:$0xff] }
  0x28   :  { %2287 = vmatpush1.bf16.msra.mxu0 %v2286_v31  ;;  %2419 = vmatpush1.bf16.msra.mxu1 %v2286_v31  ;;  %v71_v31 = vld [vmem:[%s3682_s0 + $0x128] sm:$0xff] }
  0x29   :  { %2288 = vmatprep.subr.bf16.mxu0 %v2579_v0  ;;  %2404 = vmatprep.subr.bf16.mxu1 %v2579_v0 }
  0x2c   :  { %2290 = vmatpush1.bf16.msra.mxu0 %v2289_v34  ;;  %2420 = vmatpush1.bf16.msra.mxu1 %v2289_v34  ;;  %v70_v34 = vld [vmem:[%s3682_s0 + $0x120] sm:$0xff] }
  0x2d   :  { %2291 = vmatprep.subr.bf16.mxu0 %v2579_v0  ;;  %2405 = vmatprep.subr.bf16.mxu1 %v2579_v0 }
  0x30   :  { %2293 = vmatpush1.bf16.msra.mxu0 %v2292_v37  ;;  %2421 = vmatpush1.bf16.msra.mxu1 %v2292_v37  ;;  %v214_v37 = vld [vmem:[%s3681_s1 + $0x1a0] sm:$0xff] }
  0x31   :  { %2294 = vmatprep.subr.bf16.mxu0 %v2579_v0  ;;  %2406 = vmatprep.subr.bf16.mxu1 %v2579_v0 }
  0x34   :  { %2296 = vmatpush1.bf16.msra.mxu0 %v2295_v40  ;;  %2422 = vmatpush1.bf16.msra.mxu1 %v2295_v40  ;;  %v2337_v40 = vpack.c.bf16 %v215_v38, %v214_v37  ;;  %v748_v37 = vld [vmem:[%s3683_s3 + $0x8] sm:$0xff]  ;;  %v749_v38 = vld [vmem:[%s3683_s3 + $0x10] sm:$0xff] }
  0x35   :  { %2297 = vmatprep.subr.bf16.mxu0 %v2579_v0  ;;  %2407 = vmatprep.subr.bf16.mxu1 %v2579_v0 }
  0x38   :  { %2299 = vmatpush1.bf16.msra.mxu0 %v2298_v43  ;;  %2423 = vmatpush1.bf16.msra.mxu1 %v2298_v43  ;;  %v217_v43 = vld [vmem:[%s3681_s1 + $0x1b8] sm:$0xff] }
  0x39   :  { %2300 = vmatprep.subr.bf16.mxu0 %v2579_v0  ;;  %2408 = vmatprep.subr.bf16.mxu1 %v2579_v0  ;;  %v2340_v45 = vpack.c.bf16 %v217_v43, %v216_v42  ;;  %v751_v43 = vld [vmem:[%s3683_s3 + $0x20] sm:$0xff] }
  0x3c   :  { %2302 = vmatpush1.bf16.msra.mxu0 %v2301_v46  ;;  %2424 = vmatpush1.bf16.msra.mxu1 %v2301_v46  ;;  %v83_v46 = vld [vmem:[%s3682_s0 + $0x188] sm:$0xff] }
  0x3d   :  { %2303 = vmatprep.subr.bf16.mxu0 %v2579_v0  ;;  %2409 = vmatprep.subr.bf16.mxu1 %v2579_v0 }
  0x40   :  { %2305 = vmatpush1.bf16.msra.mxu0 %v2304_v49  ;;  %2425 = vmatpush1.bf16.msra.mxu1 %v2304_v49  ;;  %v82_v49 = vld [vmem:[%s3682_s0 + $0x180] sm:$0xff] }
  0x41   :  { %2306 = vmatprep.subr.bf16.mxu0 %v2579_v0 }
  0x43   :  { %298 = vmatmul.mubr.f32.vlgmr.msra.gmra.mrb[0].mxu0 %v34_v52  ;;  %v220_v52 = vld [vmem:[%s3681_s1 + $0x1d0] sm:$0xff] }
  0x44   :  { %2308 = vmatpush1.bf16.msra.mxu0 %v2307_v53  ;;  %302 = vmatprep.mubr.f32.mxu0 %v39_v54  ;;  %v221_v53 = vld [vmem:[%s3681_s1 + $0x1d8] sm:$0xff]  ;;  %v86_v54 = vld [vmem:[%s3682_s0 + $0x1a0] sm:$0xff] }
  0x45   :  { %2309 = vmatprep.subr.bf16.mxu0 %v2579_v0  ;;  %v2346_v55 = vpack.c.bf16 %v221_v53, %v220_v52  ;;  %v755_v53 = vld [vmem:[%s3683_s3 + $0x40] sm:$0xff] }
  0x47   :  { %303 = vmatmul.mubr.f32.gmra.mrb[2].mxu0 %v38_v57  ;;  %v222_v57 = vld [vmem:[%s3681_s1 + $0x1e0] sm:$0xff] }
  0x48   :  { %307 = vmatprep.mubr.f32.mxu0 %v43_v59  ;;  %2311 = vmatpush1.bf16.msra.mxu0 %v2310_v58  ;;  %v223_v58 = vld [vmem:[%s3681_s1 + $0x1e8] sm:$0xff]  ;;  %v90_v59 = vld [vmem:[%s3682_s0 + $0x1c0] sm:$0xff] }
  0x49   :  { %2312 = vmatprep.subr.bf16.mxu0 %v2579_v0  ;;  %v2349_v60 = vpack.c.bf16 %v223_v58, %v222_v57  ;;  %v757_v58 = vld [vmem:[%s3683_s3 + $0x50] sm:$0xff] }
  0x4b   :  { %308 = vmatmul.mubr.f32.gmra.mrb[4].mxu0 %v42_v62  ;;  %v224_v62 = vld [vmem:[%s3681_s1 + $0x1f0] sm:$0xff] }
  0x4c   :  { %312 = vmatprep.mubr.f32.mxu0 %v47_v1  ;;  %2314 = vmatpush1.bf16.msra.mxu0 %v2313_v63  ;;  %v225_v63 = vld [vmem:[%s3681_s1 + $0x1f8] sm:$0xff]  ;;  %v94_v1 = vld [vmem:[%s3682_s0 + $0x1e0] sm:$0xff] }
  0x4d   :  { %2315 = vmatprep.subr.bf16.mxu0 %v2579_v0  ;;  %v2352_v2 = vpack.c.bf16 %v225_v63, %v224_v62  ;;  %v56_v63 = vld [vmem:[%s3682_s0 + $0xb0] sm:$0xff] }
  0x4f   :  { %313 = vmatmul.mubr.f32.gmra.mrb[6].mxu0 %v46_v4  ;;  %v131_v4 = vld [vmem:[%s3682_s0 + $0x308] sm:$0xff] }
  0x50   :  { %317 = vmatprep.mubr.f32.mxu0 %v51_v6  ;;  %2317 = vmatpush1.bf16.msra.mxu0 %v2316_v5  ;;  %v130_v5 = vld [vmem:[%s3682_s0 + $0x300] sm:$0xff] }
  0x51   :  { %2318 = vmatprep.subr.bf16.mxu0 %v2579_v0  ;;  %417 = vmatprep.mubr.f32.mxu1 %v131_v4  ;;  %v98_v6 = vld [vmem:[%s3682_s0 + $0x200] sm:$0xff]  ;;  %v64_v4 = vld [vmem:[%s3682_s0 + $0xf0] sm:$0xff] }
  0x52   :  { %418 = vmatmul.mubr.f32.vlgmr.msra.gmra.mrb[0].mxu1 %v130_v5  ;;  %v69_v5 = vld [vmem:[%s3682_s0 + $0x118] sm:$0xff] }
  0x53   :  { %318 = vmatmul.mubr.f32.gmra.mrb[8].mxu0 %v50_v9  ;;  %422 = vmatprep.mubr.f32.mxu1 %v135_v7  ;;  %v102_v9 = vld [vmem:[%s3682_s0 + $0x220] sm:$0xff]  ;;  %v72_v7 = vld [vmem:[%s3682_s0 + $0x130] sm:$0xff] }
  0x54   :  { %322 = vmatprep.mubr.f32.mxu0 %v55_v11  ;;  %2320 = vmatpush1.bf16.msra.mxu0 %v2319_v10  ;;  %v107_v10 = vld [vmem:[%s3682_s0 + $0x248] sm:$0xff] }
  0x55   :  { %2321 = vmatprep.subr.bf16.mxu0 %v2579_v0  ;;  %v139_v11 = vld [vmem:[%s3682_s0 + $0x348] sm:$0xff] }
  0x56   :  { %423 = vmatmul.mubr.f32.gmra.mrb[2].mxu1 %v134_v8  ;;  %v77_v8 = vld [vmem:[%s3682_s0 + $0x158] sm:$0xff] }
  0x57   :  { %323 = vmatmul.mubr.f32.gmra.mrb[10].mxu0 %v54_v14  ;;  %427 = vmatprep.mubr.f32.mxu1 %v139_v11  ;;  %v111_v14 = vld [vmem:[%s3682_s0 + $0x268] sm:$0xff]  ;;  %v80_v11 = vld [vmem:[%s3682_s0 + $0x170] sm:$0xff] }
  0x58   :  { %327 = vmatprep.mubr.f32.mxu0 %v59_v16  ;;  %2323 = vmatpush1.bf16.msra.mxu0 %v2322_v15  ;;  %v143_v15 = vld [vmem:[%s3682_s0 + $0x368] sm:$0xff]  ;;  %v142_v16 = vld [vmem:[%s3682_s0 + $0x360] sm:$0xff] }
  0x59   :  { %2324 = vmatprep.subr.bf16.mxu0 %v2579_v0 }
  0x5a   :  { %428 = vmatmul.mubr.f32.gmra.mrb[4].mxu1 %v138_v12  ;;  %v85_v12 = vld [vmem:[%s3682_s0 + $0x198] sm:$0xff] }
  0x5b   :  { %328 = vmatmul.mubr.f32.gmra.mrb[12].mxu0 %v58_v19  ;;  %432 = vmatprep.mubr.f32.mxu1 %v143_v15  ;;  %v147_v19 = vld [vmem:[%s3682_s0 + $0x388] sm:$0xff]  ;;  %v88_v15 = vld [vmem:[%s3682_s0 + $0x1b0] sm:$0xff] }
  0x5c   :  { %332 = vmatprep.mubr.f32.mxu0 %v63_v21  ;;  %2326 = vmatpush1.bf16.msra.mxu0 %v2325_v20  ;;  %v146_v20 = vld [vmem:[%s3682_s0 + $0x380] sm:$0xff] }
  0x5d   :  { %2327 = vmatprep.subr.bf16.mxu0 %v2579_v0  ;;  %v114_v21 = vld [vmem:[%s3682_s0 + $0x280] sm:$0xff] }
  0x5e   :  { %433 = vmatmul.mubr.f32.gmra.mrb[6].mxu1 %v142_v16  ;;  %v93_v16 = vld [vmem:[%s3682_s0 + $0x1d8] sm:$0xff] }
  0x5f   :  { %333 = vmatmul.mubr.f32.gmra.mrb[14].mxu0 %v62_v24  ;;  %437 = vmatprep.mubr.f32.mxu1 %v147_v19  ;;  %v150_v24 = vld [vmem:[%s3682_s0 + $0x3a0] sm:$0xff]  ;;  %v96_v19 = vld [vmem:[%s3682_s0 + $0x1f0] sm:$0xff] }
  0x60   :  { %337 = vmatprep.mubr.f32.mxu0 %v67_v26  ;;  %2329 = vmatpush1.bf16.msra.mxu0 %v2328_v25  ;;  %v118_v25 = vld [vmem:[%s3682_s0 + $0x2a0] sm:$0xff]  ;;  %v123_v26 = vld [vmem:[%s3682_s0 + $0x2c8] sm:$0xff] }
  0x61   :  { %2330 = vmatprep.subr.bf16.mxu0 %v2579_v0 }
  0x62   :  { %438 = vmatmul.mubr.f32.gmra.mrb[8].mxu1 %v146_v20  ;;  %v101_v20 = vld [vmem:[%s3682_s0 + $0x218] sm:$0xff] }
  0x63   :  { %338 = vmatmul.mubr.f32.gmra.mrb[16].mxu0 %v66_v29  ;;  %442 = vmatprep.mubr.f32.mxu1 %v151_v23  ;;  %v122_v29 = vld [vmem:[%s3682_s0 + $0x2c0] sm:$0xff]  ;;  %v104_v23 = vld [vmem:[%s3682_s0 + $0x230] sm:$0xff] }
  0x64   :  { %342 = vmatprep.mubr.f32.mxu0 %v71_v31  ;;  %2332 = vmatpush1.bf16.msra.mxu0 %v2331_v30  ;;  %v127_v30 = vld [vmem:[%s3682_s0 + $0x2e8] sm:$0xff] }
  0x65   :  { %2333 = vmatprep.subr.bf16.mxu0 %v2579_v0  ;;  %v159_v31 = vld [vmem:[%s3682_s0 + $0x3e8] sm:$0xff] }
  0x66   :  { %443 = vmatmul.mubr.f32.gmra.mrb[10].mxu1 %v150_v24  ;;  %v109_v24 = vld [vmem:[%s3682_s0 + $0x258] sm:$0xff] }
  0x67   :  { %343 = vmatmul.mubr.f32.gmra.mrb[18].mxu0 %v70_v34  ;;  %447 = vmatprep.mubr.f32.mxu1 %v155_v27  ;;  %v37_v34 = vld [vmem:[%s3682_s0 + $0x18] sm:$0xff]  ;;  %v112_v27 = vld [vmem:[%s3682_s0 + $0x270] sm:$0xff] }
  0x68   :  { %347 = vmatprep.mubr.f32.mxu0 %v75_v36  ;;  %2335 = vmatpush1.bf16.msra.mxu0 %v2334_v35  ;;  %v36_v35 = vld [vmem:[%s3682_s0 + $0x10] sm:$0xff]  ;;  %v747_v36 = vld [vmem:[%s3683_s3] sm:$0xff] }
  0x69   :  { %2336 = vmatprep.subr.bf16.mxu0 %v2579_v0 }
  0x6a   :  { %448 = vmatmul.mubr.f32.gmra.mrb[12].mxu1 %v154_v28  ;;  %v117_v28 = vld [vmem:[%s3682_s0 + $0x298] sm:$0xff] }
  0x6b   :  { %348 = vmatmul.mubr.f32.gmra.mrb[20].mxu0 %v74_v39  ;;  %452 = vmatprep.mubr.f32.mxu1 %v159_v31  ;;  %v41_v39 = vld [vmem:[%s3682_s0 + $0x38] sm:$0xff]  ;;  %v120_v31 = vld [vmem:[%s3682_s0 + $0x2b0] sm:$0xff] }
  0x6c   :  { %352 = vmatprep.mubr.f32.mxu0 %v79_v41  ;;  %2338 = vmatpush1.bf16.msra.mxu0 %v2337_v40  ;;  %v2354_v40 = vpack.c.bf16 %v748_v37, %v747_v36  ;;  %v750_v41 = vld [vmem:[%s3683_s3 + $0x18] sm:$0xff]  ;;  %v124_v36 = vld [vmem:[%s3682_s0 + $0x2d0] sm:$0xff] }
  0x6d   :  { %2339 = vmatprep.subr.bf16.mxu0 %v2579_v0  ;;  %v2358_v42 = vpack.c.bf16 %v750_v41, %v749_v38  ;;  %v129_v37 = vld [vmem:[%s3682_s0 + $0x2f8] sm:$0xff]  ;;  %v761_v38 = vld [vmem:[%s3683_s3 + $0x70] sm:$0xff] }
  0x6e   :  { %453 = vmatmul.mubr.f32.gmra.mrb[14].mxu1 %v158_v32  ;;  %2355 = vmatprep.subr.bf16.mxu1 %v2354_v40  ;;  %v125_v32 = vld [vmem:[%s3682_s0 + $0x2d8] sm:$0xff]  ;;  %v128_v41 = vld [vmem:[%s3682_s0 + $0x2f0] sm:$0xff] }
  0x6f   :  { %353 = vmatmul.mubr.f32.gmra.mrb[22].mxu0 %v78_v44  ;;  %v752_v44 = vld [vmem:[%s3683_s3 + $0x28] sm:$0xff]  ;;  %2357 = vmatpush3.bf16.msra.mxu1 %v2354_v40 }
  0x70   :  { %357 = vmatprep.mubr.f32.mxu0 %v83_v46  ;;  %2341 = vmatpush1.bf16.msra.mxu0 %v2340_v45  ;;  %v40_v45 = vld [vmem:[%s3682_s0 + $0x30] sm:$0xff]  ;;  %v45_v46 = vld [vmem:[%s3682_s0 + $0x58] sm:$0xff]  ;;  %v2362_v47 = vpack.c.bf16 %v752_v44, %v751_v43 }
  0x71   :  { %2342 = vmatprep.subr.bf16.mxu0 %v2579_v0  ;;  %2359 = vmatprep.subr.bf16.mxu1 %v2358_v42  ;;  %v132_v43 = vld [vmem:[%s3682_s0 + $0x310] sm:$0xff]  ;;  %v137_v44 = vld [vmem:[%s3682_s0 + $0x338] sm:$0xff] }
  0x73   :  { %358 = vmatmul.mubr.f32.gmra.mrb[24].mxu0 %v82_v49  ;;  %v754_v49 = vld [vmem:[%s3683_s3 + $0x38] sm:$0xff]  ;;  %2361 = vmatpush3.bf16.msra.mxu1 %v2358_v42 }
  0x74   :  { %362 = vmatprep.mubr.f32.mxu0 %v87_v51  ;;  %2344 = vmatpush1.bf16.msra.mxu0 %v2343_v50  ;;  %v44_v50 = vld [vmem:[%s3682_s0 + $0x50] sm:$0xff]  ;;  %v49_v51 = vld [vmem:[%s3682_s0 + $0x78] sm:$0xff]  ;;  %v2366_v52 = vpack.c.bf16 %v754_v49, %v753_v48 }
  0x75   :  { %2345 = vmatprep.subr.bf16.mxu0 %v2579_v0  ;;  %2363 = vmatprep.subr.bf16.mxu1 %v2362_v47  ;;  %v133_v42 = vld [vmem:[%s3682_s0 + $0x318] sm:$0xff]  ;;  %v144_v49 = vld [vmem:[%s3682_s0 + $0x370] sm:$0xff] }
  0x76   :  { %v145_v48 = vld [vmem:[%s3682_s0 + $0x378] sm:$0xff] }
  0x77   :  { %363 = vmatmul.mubr.f32.gmra.mrb[26].mxu0 %v86_v54  ;;  %v756_v54 = vld [vmem:[%s3683_s3 + $0x48] sm:$0xff]  ;;  %2365 = vmatpush3.bf16.msra.mxu1 %v2362_v47  ;;  %v140_v47 = vld [vmem:[%s3682_s0 + $0x350] sm:$0xff] }
  0x78   :  { %367 = vmatprep.mubr.f32.mxu0 %v91_v56  ;;  %2347 = vmatpush1.bf16.msra.mxu0 %v2346_v55  ;;  %v48_v55 = vld [vmem:[%s3682_s0 + $0x70] sm:$0xff]  ;;  %v53_v56 = vld [vmem:[%s3682_s0 + $0x98] sm:$0xff]  ;;  %v2370_v57 = vpack.c.bf16 %v756_v54, %v755_v53 }
  0x79   :  { %2348 = vmatprep.subr.bf16.mxu0 %v2579_v0  ;;  %2367 = vmatprep.subr.bf16.mxu1 %v2366_v52  ;;  %v152_v53 = vld [vmem:[%s3682_s0 + $0x3b0] sm:$0xff]  ;;  %v157_v54 = vld [vmem:[%s3682_s0 + $0x3d8] sm:$0xff] }
  0x7b   :  { %368 = vmatmul.mubr.f32.gmra.mrb[28].mxu0 %v90_v59  ;;  %v758_v59 = vld [vmem:[%s3683_s3 + $0x58] sm:$0xff]  ;;  %2369 = vmatpush3.bf16.msra.mxu1 %v2366_v52 }
  0x7c   :  { %372 = vmatprep.mubr.f32.mxu0 %v95_v61  ;;  %2350 = vmatpush1.bf16.msra.mxu0 %v2349_v60  ;;  %v52_v60 = vld [vmem:[%s3682_s0 + $0x90] sm:$0xff]  ;;  %v57_v61 = vld [vmem:[%s3682_s0 + $0xb8] sm:$0xff]  ;;  %v2374_v62 = vpack.c.bf16 %v758_v59, %v757_v58 }
  0x7d   :  { %2351 = vmatprep.subr.bf16.mxu0 %v2579_v0  ;;  %v103_v0 = vld [vmem:[%s3682_s0 + $0x228] sm:$0xff]  ;;  %2371 = vmatprep.subr.bf16.mxu1 %v2370_v57  ;;  %v153_v52 = vld [vmem:[%s3682_s0 + $0x3b8] sm:$0xff] }
  0x7f   :  { %373 = vmatmul.mubr.f32.gmra.mrb[30].mxu0 %v94_v1  ;;  %2373 = vmatpush3.bf16.msra.mxu1 %v2370_v57  ;;  %v61_v1 = vld [vmem:[%s3682_s0 + $0xd8] sm:$0xff]  ;;  %v160_v57 = vld [vmem:[%s3682_s0 + $0x3f0] sm:$0xff] }
  0x80   :  { %377 = vmatprep.mubr.f32.mxu0 %v99_v3  ;;  %2353 = vmatpush1.bf16.msra.mxu0 %v2352_v2  ;;  %v60_v2 = vld [vmem:[%s3682_s0 + $0xd0] sm:$0xff]  ;;  %v65_v3 = vld [vmem:[%s3682_s0 + $0xf8] sm:$0xff] }
  0x81   :  { %2375 = vmatprep.subr.bf16.mxu1 %v2374_v62 }
  0x83   :  { %378 = vmatmul.mubr.f32.gmra.mrb[32].mxu0 %v98_v6  ;;  %2377 = vmatpush3.bf16.msra.mxu1 %v2374_v62  ;;  %v68_v6 = vld [vmem:[%s3682_s0 + $0x110] sm:$0xff] }
  0x84   :  { %382 = vmatprep.mubr.f32.mxu0 %v103_v0  ;;  %v73_v0 = vld [vmem:[%s3682_s0 + $0x138] sm:$0xff] }
  0x87   :  { %383 = vmatmul.mubr.f32.gmra.mrb[34].mxu0 %v102_v9  ;;  %v76_v9 = vld [vmem:[%s3682_s0 + $0x150] sm:$0xff] }
  0x88   :  { %387 = vmatprep.mubr.f32.mxu0 %v107_v10  ;;  %v81_v10 = vld [vmem:[%s3682_s0 + $0x178] sm:$0xff] }
  0x8b   :  { %388 = vmatmul.mubr.f32.gmra.mrb[36].mxu0 %v106_v13  ;;  %v84_v13 = vld [vmem:[%s3682_s0 + $0x190] sm:$0xff] }
  0x8c   :  { %392 = vmatprep.mubr.f32.mxu0 %v111_v14  ;;  %v89_v14 = vld [vmem:[%s3682_s0 + $0x1b8] sm:$0xff] }
  0x8f   :  { %393 = vmatmul.mubr.f32.gmra.mrb[38].mxu0 %v110_v17  ;;  %v92_v17 = vld [vmem:[%s3682_s0 + $0x1d0] sm:$0xff] }
  0x90   :  { %397 = vmatprep.mubr.f32.mxu0 %v115_v18  ;;  %v97_v18 = vld [vmem:[%s3682_s0 + $0x1f8] sm:$0xff] }
  0x93   :  { %398 = vmatmul.mubr.f32.gmra.mrb[40].mxu0 %v114_v21  ;;  %v100_v21 = vld [vmem:[%s3682_s0 + $0x210] sm:$0xff] }
  0x94   :  { %402 = vmatprep.mubr.f32.mxu0 %v119_v22  ;;  %v105_v22 = vld [vmem:[%s3682_s0 + $0x238] sm:$0xff] }
  0x97   :  { %403 = vmatmul.mubr.f32.gmra.mrb[42].mxu0 %v118_v25  ;;  %v108_v25 = vld [vmem:[%s3682_s0 + $0x250] sm:$0xff] }
  0x98   :  { %407 = vmatprep.mubr.f32.mxu0 %v123_v26  ;;  %v113_v26 = vld [vmem:[%s3682_s0 + $0x278] sm:$0xff] }
  0x9b   :  { %408 = vmatmul.mubr.f32.gmra.mrb[44].mxu0 %v122_v29  ;;  %v116_v29 = vld [vmem:[%s3682_s0 + $0x290] sm:$0xff] }
  0x9c   :  { %412 = vmatprep.mubr.f32.mxu0 %v127_v30  ;;  %v121_v30 = vld [vmem:[%s3682_s0 + $0x2b8] sm:$0xff] }
  0x9f   :  { %413 = vmatmul.mubr.f32.gmra.mrb[46].mxu0 %v126_v33  ;;  %v759_v33 = vld [vmem:[%s3683_s3 + $0x60] sm:$0xff] }
  0xa0   :  { %522 = vmatprep.mubr.f32.mxu0 %v37_v34  ;;  %v760_v34 = vld [vmem:[%s3683_s3 + $0x68] sm:$0xff] }
  0xa3   :  { %523 = vmatmul.mubr.f32.vlgmr.msra.gmra.mrb[0].mxu0 %v36_v35  ;;  %v2378_v35 = vpack.c.bf16 %v760_v34, %v759_v33 }
  0xa4   :  { %527 = vmatprep.mubr.f32.mxu0 %v41_v39  ;;  %v762_v39 = vld [vmem:[%s3683_s3 + $0x78] sm:$0xff] }
  0xa5   :  { %2379 = vmatprep.subr.bf16.mxu1 %v2378_v35  ;;  %v2382_v40 = vpack.c.bf16 %v762_v39, %v761_v38 }
  0xa6   :  { %2381 = vmatpush3.bf16.msra.mxu1 %v2378_v35 }
  0xa7   :  { %528 = vmatmul.mubr.f32.gmra.mrb[2].mxu0 %v40_v45  ;;  %2383 = vmatprep.subr.bf16.mxu1 %v2382_v40  ;;  %v136_v45 = vld [vmem:[%s3682_s0 + $0x330] sm:$0xff] }
  0xa8   :  { %532 = vmatprep.mubr.f32.mxu0 %v45_v46  ;;  %v141_v46 = vld [vmem:[%s3682_s0 + $0x358] sm:$0xff] }
  0xaa   :  { %2385 = vmatpush3.bf16.msra.mxu1 %v2382_v40 }
  0xab   :  { %533 = vmatmul.mubr.f32.gmra.mrb[4].mxu0 %v44_v50  ;;  %v149_v50 = vld [vmem:[%s3682_s0 + $0x398] sm:$0xff] }
  0xac   :  { %537 = vmatprep.mubr.f32.mxu0 %v49_v51  ;;  %v148_v51 = vld [vmem:[%s3682_s0 + $0x390] sm:$0xff] }
  0xaf   :  { %538 = vmatmul.mubr.f32.gmra.mrb[6].mxu0 %v48_v55  ;;  %v156_v55 = vld [vmem:[%s3682_s0 + $0x3d0] sm:$0xff] }
  0xb0   :  { %542 = vmatprep.mubr.f32.mxu0 %v53_v56  ;;  %v161_v56 = vld [vmem:[%s3682_s0 + $0x3f8] sm:$0xff] }
  0xb3   :  { %543 = vmatmul.mubr.f32.gmra.mrb[8].mxu0 %v52_v60 }
  0xb4   :  { %547 = vmatprep.mubr.f32.mxu0 %v57_v61 }
  0xb7   :  { %548 = vmatmul.mubr.f32.gmra.mrb[10].mxu0 %v56_v63 }
  0xb8   :  { %552 = vmatprep.mubr.f32.mxu0 %v61_v1 }
  0xbb   :  { %553 = vmatmul.mubr.f32.gmra.mrb[12].mxu0 %v60_v2 }
  0xbc   :  { %557 = vmatprep.mubr.f32.mxu0 %v65_v3 }
  0xbf   :  { %558 = vmatmul.mubr.f32.gmra.mrb[14].mxu0 %v64_v4 }
  0xc0   :  { %562 = vmatprep.mubr.f32.mxu0 %v69_v5 }
  0xc3   :  { %563 = vmatmul.mubr.f32.gmra.mrb[16].mxu0 %v68_v6 }
  0xc4   :  { %567 = vmatprep.mubr.f32.mxu0 %v73_v0 }
  0xc7   :  { %568 = vmatmul.mubr.f32.gmra.mrb[18].mxu0 %v72_v7 }
  0xc8   :  { %572 = vmatprep.mubr.f32.mxu0 %v77_v8 }
  0xcb   :  { %573 = vmatmul.mubr.f32.gmra.mrb[20].mxu0 %v76_v9 }
  0xcc   :  { %577 = vmatprep.mubr.f32.mxu0 %v81_v10  ;;  %v3321_v10 = vld [vmem:[%s3684_s2] ss:$0 sm:$0xff] }
  0xcf   :  { %578 = vmatmul.mubr.f32.gmra.mrb[22].mxu0 %v80_v11 }
  0xd0   :  { %582 = vmatprep.mubr.f32.mxu0 %v85_v12 }
  0xd3   :  { %583 = vmatmul.mubr.f32.gmra.mrb[24].mxu0 %v84_v13 }
  0xd4   :  { %587 = vmatprep.mubr.f32.mxu0 %v89_v14 }
  0xd7   :  { %588 = vmatmul.mubr.f32.gmra.mrb[26].mxu0 %v88_v15 }
  0xd8   :  { %592 = vmatprep.mubr.f32.mxu0 %v93_v16 }
  0xdb   :  { %593 = vmatmul.mubr.f32.gmra.mrb[28].mxu0 %v92_v17 }
  0xdc   :  { %597 = vmatprep.mubr.f32.mxu0 %v97_v18 }
  0xdf   :  { %598 = vmatmul.mubr.f32.gmra.mrb[30].mxu0 %v96_v19 }
  0xe0   :  { %602 = vmatprep.mubr.f32.mxu0 %v101_v20 }
  0xe3   :  { %603 = vmatmul.mubr.f32.gmra.mrb[32].mxu0 %v100_v21 }
  0xe4   :  { %607 = vmatprep.mubr.f32.mxu0 %v105_v22 }
  0xe7   :  { %608 = vmatmul.mubr.f32.gmra.mrb[34].mxu0 %v104_v23 }
  0xe8   :  { %612 = vmatprep.mubr.f32.mxu0 %v109_v24 }
  0xeb   :  { %613 = vmatmul.mubr.f32.gmra.mrb[36].mxu0 %v108_v25 }
  0xec   :  { %617 = vmatprep.mubr.f32.mxu0 %v113_v26 }
  0xef   :  { %618 = vmatmul.mubr.f32.gmra.mrb[38].mxu0 %v112_v27 }
  0xf0   :  { %622 = vmatprep.mubr.f32.mxu0 %v117_v28 }
  0xf3   :  { %623 = vmatmul.mubr.f32.gmra.mrb[40].mxu0 %v116_v29 }
  0xf4   :  { %627 = vmatprep.mubr.f32.mxu0 %v121_v30 }
  0xf7   :  { %628 = vmatmul.mubr.f32.gmra.mrb[42].mxu0 %v120_v31 }
  0xf8   :  { %632 = vmatprep.mubr.f32.mxu0 %v125_v32 }
  0xfb   :  { %633 = vmatmul.mubr.f32.gmra.mrb[44].mxu0 %v124_v36 }
  0xfc   :  { %637 = vmatprep.mubr.f32.mxu0 %v129_v37 }
  0xff   :  { %638 = vmatmul.mubr.f32.gmra.mrb[46].mxu0 %v128_v41 }
 0x100   :  { %642 = vmatprep.mubr.f32.mxu0 %v133_v42 }
 0x103   :  { %643 = vmatmul.mubr.f32.gmra.mrb[48].mxu0 %v132_v43 }
 0x104   :  { %647 = vmatprep.mubr.f32.mxu0 %v137_v44 }
 0x107   :  { %648 = vmatmul.mubr.f32.gmra.mrb[50].mxu0 %v136_v45 }
 0x108   :  { %652 = vmatprep.mubr.f32.mxu0 %v141_v46 }
 0x10b   :  { %653 = vmatmul.mubr.f32.gmra.mrb[52].mxu0 %v140_v47 }
 0x10c   :  { %657 = vmatprep.mubr.f32.mxu0 %v145_v48 }
 0x10f   :  { %658 = vmatmul.mubr.f32.gmra.mrb[54].mxu0 %v144_v49 }
 0x110   :  { %662 = vmatprep.mubr.f32.mxu0 %v149_v50 }
 0x113   :  { %663 = vmatmul.mubr.f32.gmra.mrb[56].mxu0 %v148_v51 }
 0x114   :  { %667 = vmatprep.mubr.f32.mxu0 %v153_v52 }
 0x117   :  { %668 = vmatmul.mubr.f32.gmra.mrb[58].mxu0 %v152_v53 }
 0x118   :  { %672 = vmatprep.mubr.f32.mxu0 %v157_v54 }
 0x11b   :  { %673 = vmatmul.mubr.f32.gmra.mrb[60].mxu0 %v156_v55 }
 0x11c   :  { %677 = vmatprep.mubr.f32.mxu0 %v161_v56 }
 0x11f   :  { %678 = vmatmul.mubr.f32.gmra.mrb[62].mxu0 %v160_v57 }
 0x125   :  { %v3302_v58 = vpop.f32.mrb[0].mxu1 }
 0x126   :  { %v421_v59 = vpop.f32.mrb[1].mxu1 }
 0x129   :  { %v3304_v60 = vpop.f32.mrb[2].mxu1 }
 0x12a   :  { %v426_v61 = vpop.f32.mrb[3].mxu1 }
 0x12d   :  { %v3306_v62 = vpop.f32.mrb[4].mxu1 }
 0x12e   :  { %v431_v63 = vpop.f32.mrb[5].mxu1 }
 0x131   :  { %v3308_v1 = vpop.f32.mrb[6].mxu1 }
 0x132   :  { %v436_v2 = vpop.f32.mrb[7].mxu1 }
 0x135   :  { %v3310_v3 = vpop.f32.mrb[8].mxu1 }
 0x136   :  { %v441_v4 = vpop.f32.mrb[9].mxu1 }
 0x139   :  { %v3312_v5 = vpop.f32.mrb[10].mxu1 }
 0x13a   :  { %v446_v6 = vpop.f32.mrb[11].mxu1 }
 0x13d   :  { %v3314_v0 = vpop.f32.mrb[12].mxu1 }
 0x13e   :  { %v451_v7 = vpop.f32.mrb[13].mxu1 }
 0x141   :  { %v3316_v8 = vpop.f32.mrb[14].mxu1 }
 0x142   :  { %v456_v9 = vpop.f32.mrb[15].mxu1 }
 0x176   :  { %v524_v11 = vpop.f32.mrb[0].mxu0 }
 0x177   :  { %v2426_v12 = vadd.f32 %v3321_v10, %v524_v11  ;;  %v526_v13 = vpop.f32.mrb[1].mxu0 }
 0x179   :  { %v683_v14 = vmul.f32 0.01, %v2426_v12 }
 0x17a   :  { %v529_v15 = vpop.f32.mrb[2].mxu0 }
 0x17b   :  { %v715_v16 = vmax.f32 %v2426_v12, %v683_v14  ;;  %v2427_v17 = vadd.f32 %v3321_v10, %v529_v15  ;;  %v531_v18 = vpop.f32.mrb[3].mxu0 }
 0x17d   :  { %v684_v19 = vmul.f32 0.01, %v2427_v17  ;;  %2104 = vmatprep.mubr.f32.mxu1 %v715_v16 }
 0x17e   :  { %v534_v20 = vpop.f32.mrb[4].mxu0 }
 0x17f   :  { %v716_v21 = vmax.f32 %v2427_v17, %v684_v19  ;;  %v2428_v22 = vadd.f32 %v3321_v10, %v534_v20  ;;  %v536_v23 = vpop.f32.mrb[5].mxu0 }
 0x181   :  { %v685_v24 = vmul.f32 0.01, %v2428_v22  ;;  %2105 = vmatmul.mubr.f32.vlgmr.msra.gmra.mrb[16].mxu1 %v716_v21 }
 0x182   :  { %v539_v25 = vpop.f32.mrb[6].mxu0 }
 0x183   :  { %v717_v26 = vmax.f32 %v2428_v22, %v685_v24  ;;  %v2429_v27 = vadd.f32 %v3321_v10, %v539_v25  ;;  %v541_v28 = vpop.f32.mrb[7].mxu0 }
 0x185   :  { %v686_v29 = vmul.f32 0.01, %v2429_v27  ;;  %2107 = vmatprep.mubr.f32.mxu1 %v717_v26 }
 0x186   :  { %v544_v30 = vpop.f32.mrb[8].mxu0 }
 0x187   :  { %v718_v31 = vmax.f32 %v2429_v27, %v686_v29  ;;  %v2430_v32 = vadd.f32 %v3321_v10, %v544_v30  ;;  %v546_v33 = vpop.f32.mrb[9].mxu0 }
 0x189   :  { %v687_v34 = vmul.f32 0.01, %v2430_v32  ;;  %2108 = vmatmul.mubr.f32.gmra.mrb[18].mxu1 %v718_v31 }
 0x18a   :  { %v549_v35 = vpop.f32.mrb[10].mxu0 }
 0x18b   :  { %v719_v36 = vmax.f32 %v2430_v32, %v687_v34  ;;  %v2431_v37 = vadd.f32 %v3321_v10, %v549_v35  ;;  %v551_v38 = vpop.f32.mrb[11].mxu0 }
 0x18d   :  { %v688_v39 = vmul.f32 0.01, %v2431_v37  ;;  %2110 = vmatprep.mubr.f32.mxu1 %v719_v36 }
 0x18e   :  { %v554_v40 = vpop.f32.mrb[12].mxu0 }
 0x18f   :  { %v720_v41 = vmax.f32 %v2431_v37, %v688_v39  ;;  %v2432_v42 = vadd.f32 %v3321_v10, %v554_v40  ;;  %v556_v43 = vpop.f32.mrb[13].mxu0 }
 0x191   :  { %v689_v44 = vmul.f32 0.01, %v2432_v42  ;;  %2111 = vmatmul.mubr.f32.gmra.mrb[20].mxu1 %v720_v41 }
 0x192   :  { %v559_v45 = vpop.f32.mrb[14].mxu0 }
 0x193   :  { %v721_v46 = vmax.f32 %v2432_v42, %v689_v44  ;;  %v2433_v47 = vadd.f32 %v3321_v10, %v559_v45  ;;  %v561_v48 = vpop.f32.mrb[15].mxu0 }
 0x195   :  { %v690_v49 = vmul.f32 0.01, %v2433_v47  ;;  %2113 = vmatprep.mubr.f32.mxu1 %v721_v46 }
 0x196   :  { %v564_v50 = vpop.f32.mrb[16].mxu0 }
 0x197   :  { %v722_v51 = vmax.f32 %v2433_v47, %v690_v49  ;;  %v2434_v52 = vadd.f32 %v3321_v10, %v564_v50  ;;  %v566_v53 = vpop.f32.mrb[17].mxu0 }
 0x199   :  { %v691_v54 = vmul.f32 0.01, %v2434_v52  ;;  %2114 = vmatmul.mubr.f32.gmra.mrb[22].mxu1 %v722_v51 }
 0x19a   :  { %v569_v55 = vpop.f32.mrb[18].mxu0 }
 0x19b   :  { %v723_v56 = vmax.f32 %v2434_v52, %v691_v54  ;;  %v2435_v57 = vadd.f32 %v3321_v10, %v569_v55  ;;  %v571_v59 = vpop.f32.mrb[19].mxu0 }
 0x19d   :  { %v692_v61 = vmul.f32 0.01, %v2435_v57  ;;  %2116 = vmatprep.mubr.f32.mxu1 %v723_v56 }
 0x19e   :  { %v574_v63 = vpop.f32.mrb[20].mxu0 }
 0x19f   :  { %v724_v2 = vmax.f32 %v2435_v57, %v692_v61  ;;  %v2436_v4 = vadd.f32 %v3321_v10, %v574_v63  ;;  %v576_v6 = vpop.f32.mrb[21].mxu0 }
 0x1a1   :  { %v693_v7 = vmul.f32 0.01, %v2436_v4  ;;  %2117 = vmatmul.mubr.f32.gmra.mrb[24].mxu1 %v724_v2 }
 0x1a2   :  { %v579_v9 = vpop.f32.mrb[22].mxu0 }
 0x1a3   :  { %v725_v11 = vmax.f32 %v2436_v4, %v693_v7  ;;  %v2437_v12 = vadd.f32 %v3321_v10, %v579_v9  ;;  %v581_v13 = vpop.f32.mrb[23].mxu0 }
 0x1a5   :  { %v694_v14 = vmul.f32 0.01, %v2437_v12  ;;  %2119 = vmatprep.mubr.f32.mxu1 %v725_v11 }
 0x1a6   :  { %v584_v15 = vpop.f32.mrb[24].mxu0 }
 0x1a7   :  { %v726_v16 = vmax.f32 %v2437_v12, %v694_v14  ;;  %v2438_v17 = vadd.f32 %v3321_v10, %v584_v15  ;;  %v586_v18 = vpop.f32.mrb[25].mxu0 }
 0x1a9   :  { %v695_v19 = vmul.f32 0.01, %v2438_v17  ;;  %2120 = vmatmul.mubr.f32.gmra.mrb[26].mxu1 %v726_v16  ;;  %v1059_v16 = vld [vmem:[%s3685_s5] sm:$0xff] }
 0x1aa   :  { %v589_v20 = vpop.f32.mrb[26].mxu0 }
 0x1ab   :  { %v727_v21 = vmax.f32 %v2438_v17, %v695_v19  ;;  %v2439_v22 = vadd.f32 %v3321_v10, %v589_v20  ;;  %v591_v23 = vpop.f32.mrb[27].mxu0  ;;  %v1060_v17 = vld [vmem:[%s3685_s5 + $0x8] sm:$0xff] }
 0x1ad   :  { %v696_v24 = vmul.f32 0.01, %v2439_v22  ;;  %2122 = vmatprep.mubr.f32.mxu1 %v727_v21  ;;  %v420_v21 = vadd.f32 %v3321_v10, %v3302_v58  ;;  %v425_v58 = vadd.f32 %v3321_v10, %v3304_v60  ;;  %v435_v60 = vadd.f32 %v3321_v10, %v3308_v1 }
 0x1ae   :  { %v594_v25 = vpop.f32.mrb[28].mxu0 }
 0x1af   :  { %v728_v26 = vmax.f32 %v2439_v22, %v696_v24  ;;  %v2440_v27 = vadd.f32 %v3321_v10, %v594_v25  ;;  %v596_v28 = vpop.f32.mrb[29].mxu0  ;;  %v2386_v22 = vpack.c.bf16 %v1060_v17, %v1059_v16  ;;  %v1061_v25 = vld [vmem:[%s3685_s5 + $0x10] sm:$0xff] }
 0x1b1   :  { %v697_v29 = vmul.f32 0.01, %v2440_v27  ;;  %2123 = vmatmul.mubr.f32.gmra.mrb[28].mxu1 %v728_v26  ;;  %2387 = vmatprep.subr.bf16.mxu1 %v2386_v22  ;;  %v1062_v26 = vld [vmem:[%s3685_s5 + $0x18] sm:$0xff] }
 0x1b2   :  { %v599_v30 = vpop.f32.mrb[30].mxu0  ;;  %2389 = vmatpush3.bf16.msra.mxu1 %v2386_v22 }
 0x1b3   :  { %v729_v31 = vmax.f32 %v2440_v27, %v697_v29  ;;  %v2441_v32 = vadd.f32 %v3321_v10, %v599_v30  ;;  %v601_v33 = vpop.f32.mrb[31].mxu0  ;;  %v2390_v30 = vpack.c.bf16 %v1062_v26, %v1061_v25 }
 0x1b5   :  { %v698_v34 = vmul.f32 0.01, %v2441_v32  ;;  %2125 = vmatprep.mubr.f32.mxu1 %v729_v31  ;;  %2391 = vmatprep.subr.bf16.mxu1 %v2390_v30 }
 0x1b6   :  { %v604_v35 = vpop.f32.mrb[32].mxu0  ;;  %2393 = vmatpush3.bf16.msra.mxu1 %v2390_v30 }
 0x1b7   :  { %v730_v36 = vmax.f32 %v2441_v32, %v698_v34  ;;  %v2442_v37 = vadd.f32 %v3321_v10, %v604_v35  ;;  %v606_v38 = vpop.f32.mrb[33].mxu0 }
 0x1b9   :  { %v699_v39 = vmul.f32 0.01, %v2442_v37  ;;  %2126 = vmatmul.mubr.f32.gmra.mrb[30].mxu1 %v730_v36  ;;  %v430_v36 = vadd.f32 %v3321_v10, %v3306_v62 }
 0x1ba   :  { %v609_v40 = vpop.f32.mrb[34].mxu0 }
 0x1bb   :  { %v731_v41 = vmax.f32 %v2442_v37, %v699_v39  ;;  %v2443_v42 = vadd.f32 %v3321_v10, %v609_v40  ;;  %v611_v43 = vpop.f32.mrb[35].mxu0 }
 0x1bd   :  { %v700_v44 = vmul.f32 0.01, %v2443_v42  ;;  %2128 = vmatprep.mubr.f32.mxu1 %v731_v41 }
 0x1be   :  { %v614_v45 = vpop.f32.mrb[36].mxu0 }
 0x1bf   :  { %v732_v46 = vmax.f32 %v2443_v42, %v700_v44  ;;  %v2444_v47 = vadd.f32 %v3321_v10, %v614_v45  ;;  %v616_v48 = vpop.f32.mrb[37].mxu0 }
 0x1c1   :  { %v701_v49 = vmul.f32 0.01, %v2444_v47  ;;  %2129 = vmatmul.mubr.f32.gmra.mrb[32].mxu1 %v732_v46 }
 0x1c2   :  { %v619_v50 = vpop.f32.mrb[38].mxu0 }
 0x1c3   :  { %v733_v51 = vmax.f32 %v2444_v47, %v701_v49  ;;  %v2445_v52 = vadd.f32 %v3321_v10, %v619_v50  ;;  %v621_v53 = vpop.f32.mrb[39].mxu0  ;;  %v440_v47 = vadd.f32 %v3321_v10, %v3310_v3 }
 0x1c5   :  { %v702_v54 = vmul.f32 0.01, %v2445_v52  ;;  %2131 = vmatprep.mubr.f32.mxu1 %v733_v51 }
 0x1c6   :  { %v624_v55 = vpop.f32.mrb[40].mxu0 }
 0x1c7   :  { %v734_v56 = vmax.f32 %v2445_v52, %v702_v54  ;;  %v2446_v57 = vadd.f32 %v3321_v10, %v624_v55  ;;  %v626_v59 = vpop.f32.mrb[41].mxu0  ;;  %v445_v52 = vadd.f32 %v3321_v10, %v3312_v5 }
 0x1c9   :  { %v703_v61 = vmul.f32 0.01, %v2446_v57  ;;  %2132 = vmatmul.mubr.f32.gmra.mrb[34].mxu1 %v734_v56 }
 0x1ca   :  { %v629_v63 = vpop.f32.mrb[42].mxu0 }
 0x1cb   :  { %v735_v2 = vmax.f32 %v2446_v57, %v703_v61  ;;  %v2447_v4 = vadd.f32 %v3321_v10, %v629_v63  ;;  %v631_v6 = vpop.f32.mrb[43].mxu0  ;;  %v450_v57 = vadd.f32 %v3321_v10, %v3314_v0  ;;  %v3378_v0 = vld [vmem:[%s3686_s4] ss:$0 sm:$0xff] }
 0x1cd   :  { %v704_v7 = vmul.f32 0.01, %v2447_v4  ;;  %2134 = vmatprep.mubr.f32.mxu1 %v735_v2 }
 0x1ce   :  { %v634_v9 = vpop.f32.mrb[44].mxu0 }
 0x1cf   :  { %v736_v11 = vmax.f32 %v2447_v4, %v704_v7  ;;  %v2448_v12 = vadd.f32 %v3321_v10, %v634_v9  ;;  %v636_v13 = vpop.f32.mrb[45].mxu0  ;;  %v455_v4 = vadd.f32 %v3321_v10, %v3316_v8 }
 0x1d1   :  { %v705_v14 = vmul.f32 0.01, %v2448_v12  ;;  %2135 = vmatmul.mubr.f32.gmra.mrb[36].mxu1 %v736_v11 }
 0x1d2   :  { %v639_v15 = vpop.f32.mrb[46].mxu0 }
 0x1d3   :  { %v737_v18 = vmax.f32 %v2448_v12, %v705_v14  ;;  %v2449_v19 = vadd.f32 %v3321_v10, %v639_v15  ;;  %v641_v20 = vpop.f32.mrb[47].mxu0 }
 0x1d5   :  { %v706_v23 = vmul.f32 0.01, %v2449_v19  ;;  %2137 = vmatprep.mubr.f32.mxu1 %v737_v18 }
 0x1d6   :  { %v644_v24 = vpop.f32.mrb[48].mxu0 }
 0x1d7   :  { %v738_v27 = vmax.f32 %v2449_v19, %v706_v23  ;;  %v645_v28 = vadd.f32 %v644_v24, %v420_v21  ;;  %v646_v29 = vpop.f32.mrb[49].mxu0 }
 0x1d9   :  { %v707_v31 = vmul.f32 0.01, %v645_v28  ;;  %2138 = vmatmul.mubr.f32.gmra.mrb[38].mxu1 %v738_v27 }
 0x1da   :  { %v649_v32 = vpop.f32.mrb[50].mxu0 }
 0x1db   :  { %v739_v33 = vmax.f32 %v645_v28, %v707_v31  ;;  %v650_v34 = vadd.f32 %v649_v32, %v425_v58  ;;  %v651_v35 = vpop.f32.mrb[51].mxu0 }
 0x1dd   :  { %v708_v37 = vmul.f32 0.01, %v650_v34  ;;  %2140 = vmatprep.mubr.f32.mxu1 %v739_v33 }
 0x1de   :  { %v654_v38 = vpop.f32.mrb[52].mxu0 }
 0x1df   :  { %v740_v39 = vmax.f32 %v650_v34, %v708_v37  ;;  %v655_v40 = vadd.f32 %v654_v38, %v430_v36  ;;  %v656_v41 = vpop.f32.mrb[53].mxu0 }
 0x1e1   :  { %v709_v42 = vmul.f32 0.01, %v655_v40  ;;  %2141 = vmatmul.mubr.f32.gmra.mrb[40].mxu1 %v740_v39 }
 0x1e2   :  { %v659_v43 = vpop.f32.mrb[54].mxu0 }
 0x1e3   :  { %v741_v44 = vmax.f32 %v655_v40, %v709_v42  ;;  %v660_v45 = vadd.f32 %v659_v43, %v435_v60  ;;  %v661_v46 = vpop.f32.mrb[55].mxu0 }
 0x1e5   :  { %v710_v48 = vmul.f32 0.01, %v660_v45  ;;  %2143 = vmatprep.mubr.f32.mxu1 %v741_v44 }
 0x1e6   :  { %v664_v62 = vpop.f32.mrb[56].mxu0 }
 0x1e7   :  { %v742_v49 = vmax.f32 %v660_v45, %v710_v48  ;;  %v665_v50 = vadd.f32 %v664_v62, %v440_v47  ;;  %v666_v51 = vpop.f32.mrb[57].mxu0 }
 0x1e9   :  { %v711_v53 = vmul.f32 0.01, %v665_v50  ;;  %2144 = vmatmul.mubr.f32.gmra.mrb[42].mxu1 %v742_v49 }
 0x1ea   :  { %v669_v1 = vpop.f32.mrb[58].mxu0 }
 0x1eb   :  { %v743_v54 = vmax.f32 %v665_v50, %v711_v53  ;;  %v670_v55 = vadd.f32 %v669_v1, %v445_v52  ;;  %v671_v56 = vpop.f32.mrb[59].mxu0 }
 0x1ed   :  { %v712_v59 = vmul.f32 0.01, %v670_v55  ;;  %2146 = vmatprep.mubr.f32.mxu1 %v743_v54 }
 0x1ee   :  { %v674_v3 = vpop.f32.mrb[60].mxu0 }
 0x1ef   :  { %v744_v61 = vmax.f32 %v670_v55, %v712_v59  ;;  %v675_v63 = vadd.f32 %v674_v3, %v450_v57  ;;  %v676_v2 = vpop.f32.mrb[61].mxu0 }
 0x1f1   :  { %v713_v6 = vmul.f32 0.01, %v675_v63  ;;  %2147 = vmatmul.mubr.f32.gmra.mrb[44].mxu1 %v744_v61 }
 0x1f2   :  { %v679_v5 = vpop.f32.mrb[62].mxu0 }
 0x1f3   :  { %v745_v7 = vmax.f32 %v675_v63, %v713_v6  ;;  %v680_v9 = vadd.f32 %v679_v5, %v455_v4  ;;  %v681_v11 = vpop.f32.mrb[63].mxu0 }
 0x1f5   :  { %v714_v12 = vmul.f32 0.01, %v680_v9  ;;  %2149 = vmatprep.mubr.f32.mxu1 %v745_v7 }
 0x1f7   :  { %v746_v13 = vmax.f32 %v680_v9, %v714_v12 }
 0x1f9   :  { %2150 = vmatmul.mubr.f32.gmra.mrb[46].mxu1 %v746_v13 }
 0x254   :  { %v2106_v14 = vpop.f32.mrb[16].mxu1 }
 0x255   :  { %v842_v15 = vadd.f32 %v2106_v14, %v3378_v0  ;;  %v836_v16 = vpop.f32.mrb[17].mxu1 }
 0x256   :  { %v837_v8 = vadd.f32 %v3378_v0, %v836_v16 }
 0x257   :  { %v996_v10 = vmul.f32 0.01, %v842_v15 }
 0x258   :  { %v995_v17 = vmul.f32 0.01, %v837_v8 }
 0x259   :  { %v1028_v19 = vmax.f32 %v842_v15, %v996_v10 }
 0x25a   :  { %v1027_v18 = vmax.f32 %v837_v8, %v995_v17 }
 0x25c   :  { %v2109_v20 = vpop.f32.mrb[18].mxu1  ;;  %2160 = vmatprep.mubr.msk.f32.mxu1 %vm1070_vm0, %v1027_v18 }
 0x25d   :  { %v852_v21 = vadd.f32 %v2109_v20, %v3378_v0  ;;  %v846_v22 = vpop.f32.mrb[19].mxu1  ;;  %2161 = vmatmul.mubr.msk.f32.vlgmr.msra.gmra.mrb[48].mxu1 %vm1070_vm0, %v1028_v19 }
 0x25e   :  { %v847_v23 = vadd.f32 %v3378_v0, %v846_v22 }
 0x25f   :  { %v998_v24 = vmul.f32 0.01, %v852_v21 }
 0x260   :  { %v997_v25 = vmul.f32 0.01, %v847_v23 }
 0x261   :  { %v1030_v27 = vmax.f32 %v852_v21, %v998_v24 }
 0x262   :  { %v1029_v26 = vmax.f32 %v847_v23, %v997_v25 }
 0x264   :  { %v2112_v28 = vpop.f32.mrb[20].mxu1  ;;  %2163 = vmatprep.mubr.msk.f32.mxu1 %vm1070_vm0, %v1029_v26 }
 0x265   :  { %v862_v29 = vadd.f32 %v2112_v28, %v3378_v0  ;;  %v856_v58 = vpop.f32.mrb[21].mxu1  ;;  %2164 = vmatmul.mubr.msk.f32.gmra.mrb[50].mxu1 %vm1070_vm0, %v1030_v27 }
 0x266   :  { %v857_v30 = vadd.f32 %v3378_v0, %v856_v58 }
 0x267   :  { %v1000_v31 = vmul.f32 0.01, %v862_v29 }
 0x268   :  { %v999_v32 = vmul.f32 0.01, %v857_v30 }
 0x269   :  { %v1032_v34 = vmax.f32 %v862_v29, %v1000_v31 }
 0x26a   :  { %v1031_v33 = vmax.f32 %v857_v30, %v999_v32 }
 0x26c   :  { %v2115_v35 = vpop.f32.mrb[22].mxu1  ;;  %2166 = vmatprep.mubr.msk.f32.mxu1 %vm1070_vm0, %v1031_v33 }
 0x26d   :  { %v872_v36 = vadd.f32 %v2115_v35, %v3378_v0  ;;  %v866_v37 = vpop.f32.mrb[23].mxu1  ;;  %2167 = vmatmul.mubr.msk.f32.gmra.mrb[52].mxu1 %vm1070_vm0, %v1032_v34 }
 0x26e   :  { %v867_v38 = vadd.f32 %v3378_v0, %v866_v37 }
 0x26f   :  { %v1002_v39 = vmul.f32 0.01, %v872_v36 }
 0x270   :  { %v1001_v40 = vmul.f32 0.01, %v867_v38 }
 0x271   :  { %v1034_v60 = vmax.f32 %v872_v36, %v1002_v39 }
 0x272   :  { %v1033_v41 = vmax.f32 %v867_v38, %v1001_v40 }
 0x274   :  { %v2118_v42 = vpop.f32.mrb[24].mxu1  ;;  %2169 = vmatprep.mubr.msk.f32.mxu1 %vm1070_vm0, %v1033_v41 }
 0x275   :  { %v882_v43 = vadd.f32 %v2118_v42, %v3378_v0  ;;  %v876_v44 = vpop.f32.mrb[25].mxu1  ;;  %2170 = vmatmul.mubr.msk.f32.gmra.mrb[54].mxu1 %vm1070_vm0, %v1034_v60 }
 0x276   :  { %v877_v45 = vadd.f32 %v3378_v0, %v876_v44 }
 0x277   :  { %v1004_v46 = vmul.f32 0.01, %v882_v43 }
 0x278   :  { %v1003_v47 = vmul.f32 0.01, %v877_v45 }
 0x279   :  { %v1036_v62 = vmax.f32 %v882_v43, %v1004_v46 }
 0x27a   :  { %v1035_v48 = vmax.f32 %v877_v45, %v1003_v47  ;;  %v1456_v47 = vld [vmem:[%s3687_s7] sm:$0xff] }
 0x27b   :  { %2208 = vmatprep.subr.mxu1 %v1456_v47 }
 0x27c   :  { %v2121_v49 = vpop.f32.mrb[26].mxu1  ;;  %2172 = vmatprep.mubr.msk.f32.mxu1 %vm1070_vm0, %v1035_v48  ;;  %2209 = vmatpush3.msra.mxu1 %v1456_v47 }
 0x27d   :  { %v892_v50 = vadd.f32 %v2121_v49, %v3378_v0  ;;  %v886_v51 = vpop.f32.mrb[27].mxu1  ;;  %2173 = vmatmul.mubr.msk.f32.gmra.mrb[56].mxu1 %vm1070_vm0, %v1036_v62 }
 0x27e   :  { %v887_v52 = vadd.f32 %v3378_v0, %v886_v51 }
 0x27f   :  { %v1006_v53 = vmul.f32 0.01, %v892_v50 }
 0x280   :  { %v1005_v1 = vmul.f32 0.01, %v887_v52 }
 0x281   :  { %v1038_v55 = vmax.f32 %v892_v50, %v1006_v53 }
 0x282   :  { %v1037_v54 = vmax.f32 %v887_v52, %v1005_v1 }
 0x284   :  { %v2124_v56 = vpop.f32.mrb[28].mxu1  ;;  %2175 = vmatprep.mubr.msk.f32.mxu1 %vm1070_vm0, %v1037_v54 }
 0x285   :  { %v902_v57 = vadd.f32 %v2124_v56, %v3378_v0  ;;  %v896_v59 = vpop.f32.mrb[29].mxu1  ;;  %2176 = vmatmul.mubr.msk.f32.gmra.mrb[58].mxu1 %vm1070_vm0, %v1038_v55 }
 0x286   :  { %v897_v3 = vadd.f32 %v3378_v0, %v896_v59 }
 0x287   :  { %v1008_v61 = vmul.f32 0.01, %v902_v57 }
 0x288   :  { %v1007_v63 = vmul.f32 0.01, %v897_v3 }
 0x289   :  { %v1040_v4 = vmax.f32 %v902_v57, %v1008_v61 }
 0x28a   :  { %v1039_v2 = vmax.f32 %v897_v3, %v1007_v63 }
 0x28c   :  { %v2127_v6 = vpop.f32.mrb[30].mxu1  ;;  %2178 = vmatprep.mubr.msk.f32.mxu1 %vm1070_vm0, %v1039_v2 }
 0x28d   :  { %v912_v5 = vadd.f32 %v2127_v6, %v3378_v0  ;;  %v906_v7 = vpop.f32.mrb[31].mxu1  ;;  %2179 = vmatmul.mubr.msk.f32.gmra.mrb[60].mxu1 %vm1070_vm0, %v1040_v4 }
 0x28e   :  { %v907_v9 = vadd.f32 %v3378_v0, %v906_v7 }
 0x28f   :  { %v1010_v11 = vmul.f32 0.01, %v912_v5 }
 0x290   :  { %v1009_v12 = vmul.f32 0.01, %v907_v9 }
 0x291   :  { %v1042_v14 = vmax.f32 %v912_v5, %v1010_v11 }
 0x292   :  { %v1041_v13 = vmax.f32 %v907_v9, %v1009_v12 }
 0x294   :  { %v2130_v15 = vpop.f32.mrb[32].mxu1  ;;  %2181 = vmatprep.mubr.msk.f32.mxu1 %vm1070_vm0, %v1041_v13 }
 0x295   :  { %v922_v16 = vadd.f32 %v2130_v15, %v3378_v0  ;;  %v916_v8 = vpop.f32.mrb[33].mxu1  ;;  %2182 = vmatmul.mubr.msk.f32.gmra.mrb[62].mxu1 %vm1070_vm0, %v1042_v14 }
 0x296   :  { %v917_v10 = vadd.f32 %v3378_v0, %v916_v8  ;;  %v3450_v8 = vld [vmem:[%s3688_s6] ss:$0 sm:$0xff] }
 0x297   :  { %v1012_v17 = vmul.f32 0.01, %v922_v16 }
 0x298   :  { %v1011_v18 = vmul.f32 0.01, %v917_v10 }
 0x299   :  { %v1044_v20 = vmax.f32 %v922_v16, %v1012_v17 }
 0x29a   :  { %v1043_v19 = vmax.f32 %v917_v10, %v1011_v18 }
 0x29c   :  { %v2133_v21 = vpop.f32.mrb[34].mxu1  ;;  %2184 = vmatprep.mubr.msk.f32.mxu1 %vm1070_vm0, %v1043_v19 }
 0x29d   :  { %v932_v22 = vadd.f32 %v2133_v21, %v3378_v0  ;;  %v926_v23 = vpop.f32.mrb[35].mxu1  ;;  %2185 = vmatmul.mubr.msk.f32.gmra.mrb[64].mxu1 %vm1070_vm0, %v1044_v20 }
 0x29e   :  { %v927_v24 = vadd.f32 %v3378_v0, %v926_v23 }
 0x29f   :  { %v1014_v25 = vmul.f32 0.01, %v932_v22 }
 0x2a0   :  { %v1013_v26 = vmul.f32 0.01, %v927_v24 }
 0x2a1   :  { %v1046_v28 = vmax.f32 %v932_v22, %v1014_v25 }
 0x2a2   :  { %v1045_v27 = vmax.f32 %v927_v24, %v1013_v26 }
 0x2a4   :  { %v2136_v29 = vpop.f32.mrb[36].mxu1  ;;  %2187 = vmatprep.mubr.msk.f32.mxu1 %vm1070_vm0, %v1045_v27 }
 0x2a5   :  { %v942_v58 = vadd.f32 %v2136_v29, %v3378_v0  ;;  %v936_v30 = vpop.f32.mrb[37].mxu1  ;;  %2188 = vmatmul.mubr.msk.f32.gmra.mrb[66].mxu1 %vm1070_vm0, %v1046_v28 }
 0x2a6   :  { %v937_v31 = vadd.f32 %v3378_v0, %v936_v30 }
 0x2a7   :  { %v1016_v32 = vmul.f32 0.01, %v942_v58 }
 0x2a8   :  { %v1015_v33 = vmul.f32 0.01, %v937_v31 }
 0x2a9   :  { %v1048_v35 = vmax.f32 %v942_v58, %v1016_v32 }
 0x2aa   :  { %v1047_v34 = vmax.f32 %v937_v31, %v1015_v33 }
 0x2ac   :  { %v2139_v36 = vpop.f32.mrb[38].mxu1  ;;  %2190 = vmatprep.mubr.msk.f32.mxu1 %vm1070_vm0, %v1047_v34 }
 0x2ad   :  { %v952_v37 = vadd.f32 %v2139_v36, %v3378_v0  ;;  %v946_v38 = vpop.f32.mrb[39].mxu1  ;;  %2191 = vmatmul.mubr.msk.f32.gmra.mrb[68].mxu1 %vm1070_vm0, %v1048_v35 }
 0x2ae   :  { %v947_v39 = vadd.f32 %v3378_v0, %v946_v38 }
 0x2af   :  { %v1018_v40 = vmul.f32 0.01, %v952_v37 }
 0x2b0   :  { %v1017_v41 = vmul.f32 0.01, %v947_v39 }
 0x2b1   :  { %v1050_v42 = vmax.f32 %v952_v37, %v1018_v40 }
 0x2b2   :  { %v1049_v60 = vmax.f32 %v947_v39, %v1017_v41 }
 0x2b4   :  { %v2142_v43 = vpop.f32.mrb[40].mxu1  ;;  %2193 = vmatprep.mubr.msk.f32.mxu1 %vm1070_vm0, %v1049_v60 }
 0x2b5   :  { %v962_v44 = vadd.f32 %v2142_v43, %v3378_v0  ;;  %v956_v45 = vpop.f32.mrb[41].mxu1  ;;  %2194 = vmatmul.mubr.msk.f32.gmra.mrb[70].mxu1 %vm1070_vm0, %v1050_v42 }
 0x2b6   :  { %v957_v46 = vadd.f32 %v3378_v0, %v956_v45 }
 0x2b7   :  { %v1020_v48 = vmul.f32 0.01, %v962_v44 }
 0x2b8   :  { %v1019_v62 = vmul.f32 0.01, %v957_v46 }
 0x2b9   :  { %v1052_v50 = vmax.f32 %v962_v44, %v1020_v48 }
 0x2ba   :  { %v1051_v49 = vmax.f32 %v957_v46, %v1019_v62 }
 0x2bc   :  { %v2145_v51 = vpop.f32.mrb[42].mxu1  ;;  %2196 = vmatprep.mubr.msk.f32.mxu1 %vm1070_vm0, %v1051_v49 }
 0x2bd   :  { %v972_v52 = vadd.f32 %v2145_v51, %v3378_v0  ;;  %v966_v53 = vpop.f32.mrb[43].mxu1  ;;  %2197 = vmatmul.mubr.msk.f32.gmra.mrb[72].mxu1 %vm1070_vm0, %v1052_v50 }
 0x2be   :  { %v967_v1 = vadd.f32 %v3378_v0, %v966_v53 }
 0x2bf   :  { %v1022_v54 = vmul.f32 0.01, %v972_v52 }
 0x2c0   :  { %v1021_v55 = vmul.f32 0.01, %v967_v1 }
 0x2c1   :  { %v1054_v57 = vmax.f32 %v972_v52, %v1022_v54 }
 0x2c2   :  { %v1053_v56 = vmax.f32 %v967_v1, %v1021_v55 }
 0x2c4   :  { %v2148_v59 = vpop.f32.mrb[44].mxu1  ;;  %2199 = vmatprep.mubr.msk.f32.mxu1 %vm1070_vm0, %v1053_v56 }
 0x2c5   :  { %v982_v3 = vadd.f32 %v2148_v59, %v3378_v0  ;;  %v976_v61 = vpop.f32.mrb[45].mxu1  ;;  %2200 = vmatmul.mubr.msk.f32.gmra.mrb[74].mxu1 %vm1070_vm0, %v1054_v57 }
 0x2c6   :  { %v977_v63 = vadd.f32 %v3378_v0, %v976_v61 }
 0x2c7   :  { %v1024_v2 = vmul.f32 0.01, %v982_v3 }
 0x2c8   :  { %v1023_v4 = vmul.f32 0.01, %v977_v63 }
 0x2c9   :  { %v1056_v5 = vmax.f32 %v982_v3, %v1024_v2 }
 0x2ca   :  { %v1055_v6 = vmax.f32 %v977_v63, %v1023_v4 }
 0x2cc   :  { %v2151_v7 = vpop.f32.mrb[46].mxu1  ;;  %2202 = vmatprep.mubr.msk.f32.mxu1 %vm1070_vm0, %v1055_v6 }
 0x2cd   :  { %v992_v9 = vadd.f32 %v2151_v7, %v3378_v0  ;;  %v986_v11 = vpop.f32.mrb[47].mxu1  ;;  %2203 = vmatmul.mubr.msk.f32.gmra.mrb[76].mxu1 %vm1070_vm0, %v1056_v5 }
 0x2ce   :  { %v987_v12 = vadd.f32 %v3378_v0, %v986_v11  ;;  %v14_v0 = vstv %s3689_s8 }
 0x2cf   :  { %v1026_v13 = vmul.f32 0.01, %v992_v9  ;;  %15 = vst [vmem:[#allocation2] sm:$0x1] %v14_v0 }
 0x2d0   :  { %v1025_v14 = vmul.f32 0.01, %v987_v12 }
 0x2d1   :  { %v1058_v16 = vmax.f32 %v992_v9, %v1026_v13 }
 0x2d2   :  { %v1057_v15 = vmax.f32 %v987_v12, %v1025_v14 }
 0x2d4   :  { %2205 = vmatprep.mubr.msk.f32.mxu1 %vm1070_vm0, %v1057_v15 }
 0x2d5   :  { %2206 = vmatmul.mubr.msk.f32.gmra.mrb[78].mxu1 %vm1070_vm0, %v1058_v16 }
 0x330   :  { %v2162_v10 = vpop.f32.mrb[48].mxu1 }
 0x331   :  { %v1239_v17 = vadd.f32 %v2162_v10, %v3450_v8  ;;  %v1233_v18 = vpop.f32.mrb[49].mxu1 }
 0x332   :  { %v1234_v19 = vadd.f32 %v3450_v8, %v1233_v18 }
 0x333   :  { %v1393_v20 = vmul.f32 0.01, %v1239_v17 }
 0x334   :  { %v1392_v21 = vmul.f32 0.01, %v1234_v19 }
 0x335   :  { %v1425_v23 = vmax.f32 %v1239_v17, %v1393_v20 }
 0x336   :  { %v1424_v22 = vmax.f32 %v1234_v19, %v1392_v21 }
 0x338   :  { %v2165_v24 = vpop.f32.mrb[50].mxu1  ;;  %2210 = vmatprep.mubr.msk.f32.mxu1 %vm1464_vm1, %v1424_v22 }
 0x339   :  { %v1249_v25 = vadd.f32 %v2165_v24, %v3450_v8  ;;  %v1243_v26 = vpop.f32.mrb[51].mxu1  ;;  %2211 = vmatmul.mubr.msk.f32.vlgmr.msra.gmra.mrb[80].mxu1 %vm1464_vm1, %v1425_v23 }
 0x33a   :  { %v1244_v27 = vadd.f32 %v3450_v8, %v1243_v26 }
 0x33b   :  { %v1395_v28 = vmul.f32 0.01, %v1249_v25 }
 0x33c   :  { %v1394_v29 = vmul.f32 0.01, %v1244_v27 }
 0x33d   :  { %v1427_v30 = vmax.f32 %v1249_v25, %v1395_v28 }
 0x33e   :  { %v1426_v58 = vmax.f32 %v1244_v27, %v1394_v29 }
 0x340   :  { %v2168_v31 = vpop.f32.mrb[52].mxu1  ;;  %2213 = vmatprep.mubr.msk.f32.mxu1 %vm1464_vm1, %v1426_v58 }
 0x341   :  { %v1259_v32 = vadd.f32 %v2168_v31, %v3450_v8  ;;  %v1253_v33 = vpop.f32.mrb[53].mxu1  ;;  %2214 = vmatmul.mubr.msk.f32.gmra.mrb[82].mxu1 %vm1464_vm1, %v1427_v30 }
 0x342   :  { %v1254_v34 = vadd.f32 %v3450_v8, %v1253_v33 }
 0x343   :  { %v1397_v35 = vmul.f32 0.01, %v1259_v32 }
 0x344   :  { %v1396_v36 = vmul.f32 0.01, %v1254_v34 }
 0x345   :  { %v1429_v38 = vmax.f32 %v1259_v32, %v1397_v35 }
 0x346   :  { %v1428_v37 = vmax.f32 %v1254_v34, %v1396_v36 }
 0x348   :  { %v2171_v39 = vpop.f32.mrb[54].mxu1  ;;  %2216 = vmatprep.mubr.msk.f32.mxu1 %vm1464_vm1, %v1428_v37 }
 0x349   :  { %v1269_v40 = vadd.f32 %v2171_v39, %v3450_v8  ;;  %v1263_v41 = vpop.f32.mrb[55].mxu1  ;;  %2217 = vmatmul.mubr.msk.f32.gmra.mrb[84].mxu1 %vm1464_vm1, %v1429_v38 }
 0x34a   :  { %v1264_v60 = vadd.f32 %v3450_v8, %v1263_v41 }
 0x34b   :  { %v1399_v42 = vmul.f32 0.01, %v1269_v40 }
 0x34c   :  { %v1398_v43 = vmul.f32 0.01, %v1264_v60 }
 0x34d   :  { %v1431_v45 = vmax.f32 %v1269_v40, %v1399_v42 }
 0x34e   :  { %v1430_v44 = vmax.f32 %v1264_v60, %v1398_v43 }
 0x350   :  { %v2174_v46 = vpop.f32.mrb[56].mxu1  ;;  %2219 = vmatprep.mubr.msk.f32.mxu1 %vm1464_vm1, %v1430_v44 }
 0x351   :  { %v1279_v47 = vadd.f32 %v2174_v46, %v3450_v8  ;;  %v1273_v48 = vpop.f32.mrb[57].mxu1  ;;  %2220 = vmatmul.mubr.msk.f32.gmra.mrb[86].mxu1 %vm1464_vm1, %v1431_v45 }
 0x352   :  { %v1274_v62 = vadd.f32 %v3450_v8, %v1273_v48 }
 0x353   :  { %v1401_v49 = vmul.f32 0.01, %v1279_v47 }
 0x354   :  { %v1400_v50 = vmul.f32 0.01, %v1274_v62 }
 0x355   :  { %v1433_v52 = vmax.f32 %v1279_v47, %v1401_v49 }
 0x356   :  { %v1432_v51 = vmax.f32 %v1274_v62, %v1400_v50 }
 0x358   :  { %v2177_v53 = vpop.f32.mrb[58].mxu1  ;;  %2222 = vmatprep.mubr.msk.f32.mxu1 %vm1464_vm1, %v1432_v51 }
 0x359   :  { %v1289_v1 = vadd.f32 %v2177_v53, %v3450_v8  ;;  %v1283_v54 = vpop.f32.mrb[59].mxu1  ;;  %2223 = vmatmul.mubr.msk.f32.gmra.mrb[88].mxu1 %vm1464_vm1, %v1433_v52 }
 0x35a   :  { %v1284_v55 = vadd.f32 %v3450_v8, %v1283_v54 }
 0x35b   :  { %v1403_v56 = vmul.f32 0.01, %v1289_v1 }
 0x35c   :  { %v1402_v57 = vmul.f32 0.01, %v1284_v55 }
 0x35d   :  { %v1435_v3 = vmax.f32 %v1289_v1, %v1403_v56 }
 0x35e   :  { %v1434_v59 = vmax.f32 %v1284_v55, %v1402_v57 }
 0x360   :  { %v2180_v61 = vpop.f32.mrb[60].mxu1  ;;  %2225 = vmatprep.mubr.msk.f32.mxu1 %vm1464_vm1, %v1434_v59 }
 0x361   :  { %v1299_v63 = vadd.f32 %v2180_v61, %v3450_v8  ;;  %v1293_v2 = vpop.f32.mrb[61].mxu1  ;;  %2226 = vmatmul.mubr.msk.f32.gmra.mrb[90].mxu1 %vm1464_vm1, %v1435_v3 }
 0x362   :  { %v1294_v4 = vadd.f32 %v3450_v8, %v1293_v2 }
 0x363   :  { %v1405_v6 = vmul.f32 0.01, %v1299_v63 }
 0x364   :  { %v1404_v5 = vmul.f32 0.01, %v1294_v4 }
 0x365   :  { %v1437_v9 = vmax.f32 %v1299_v63, %v1405_v6 }
 0x366   :  { %v1436_v7 = vmax.f32 %v1294_v4, %v1404_v5 }
 0x368   :  { %v2183_v11 = vpop.f32.mrb[62].mxu1  ;;  %2228 = vmatprep.mubr.msk.f32.mxu1 %vm1464_vm1, %v1436_v7 }
 0x369   :  { %v1309_v12 = vadd.f32 %v2183_v11, %v3450_v8  ;;  %v1303_v13 = vpop.f32.mrb[63].mxu1  ;;  %2229 = vmatmul.mubr.msk.f32.gmra.mrb[92].mxu1 %vm1464_vm1, %v1437_v9 }
 0x36a   :  { %v1304_v14 = vadd.f32 %v3450_v8, %v1303_v13 }
 0x36b   :  { %v1407_v15 = vmul.f32 0.01, %v1309_v12 }
 0x36c   :  { %v1406_v16 = vmul.f32 0.01, %v1304_v14 }
 0x36d   :  { %v1439_v17 = vmax.f32 %v1309_v12, %v1407_v15 }
 0x36e   :  { %v1438_v10 = vmax.f32 %v1304_v14, %v1406_v16 }
 0x370   :  { %v2186_v18 = vpop.f32.mrb[64].mxu1  ;;  %2231 = vmatprep.mubr.msk.f32.mxu1 %vm1464_vm1, %v1438_v10 }
 0x371   :  { %v1319_v19 = vadd.f32 %v2186_v18, %v3450_v8  ;;  %v1313_v0 = vpop.f32.mrb[65].mxu1  ;;  %2232 = vmatmul.mubr.msk.f32.gmra.mrb[94].mxu1 %vm1464_vm1, %v1439_v17 }
 0x372   :  { %v1314_v20 = vadd.f32 %v3450_v8, %v1313_v0 }
 0x373   :  { %v1409_v21 = vmul.f32 0.01, %v1319_v19 }
 0x374   :  { %v1408_v22 = vmul.f32 0.01, %v1314_v20 }
 0x375   :  { %v1441_v24 = vmax.f32 %v1319_v19, %v1409_v21  ;;  %v3519_v19 = vld [vmem:[#allocation2] ss:$0 sm:$0xff] }
 0x376   :  { %v1440_v23 = vmax.f32 %v1314_v20, %v1408_v22 }
 0x378   :  { %v2189_v25 = vpop.f32.mrb[66].mxu1  ;;  %2234 = vmatprep.mubr.msk.f32.mxu1 %vm1464_vm1, %v1440_v23 }
 0x379   :  { %v1329_v26 = vadd.f32 %v2189_v25, %v3450_v8  ;;  %v1323_v27 = vpop.f32.mrb[67].mxu1  ;;  %2235 = vmatmul.mubr.msk.f32.gmra.mrb[96].mxu1 %vm1464_vm1, %v1441_v24 }
 0x37a   :  { %v1324_v28 = vadd.f32 %v3450_v8, %v1323_v27 }
 0x37b   :  { %v1411_v29 = vmul.f32 0.01, %v1329_v26 }
 0x37c   :  { %v1410_v58 = vmul.f32 0.01, %v1324_v28 }
 0x37d   :  { %v1443_v31 = vmax.f32 %v1329_v26, %v1411_v29 }
 0x37e   :  { %v1442_v30 = vmax.f32 %v1324_v28, %v1410_v58 }
 0x380   :  { %v2192_v32 = vpop.f32.mrb[68].mxu1  ;;  %2237 = vmatprep.mubr.msk.f32.mxu1 %vm1464_vm1, %v1442_v30 }
 0x381   :  { %v1339_v33 = vadd.f32 %v2192_v32, %v3450_v8  ;;  %v1333_v34 = vpop.f32.mrb[69].mxu1  ;;  %2238 = vmatmul.mubr.msk.f32.gmra.mrb[98].mxu1 %vm1464_vm1, %v1443_v31 }
 0x382   :  { %v1334_v35 = vadd.f32 %v3450_v8, %v1333_v34 }
 0x383   :  { %v1413_v36 = vmul.f32 0.01, %v1339_v33 }
 0x384   :  { %v1412_v37 = vmul.f32 0.01, %v1334_v35 }
 0x385   :  { %v1445_v39 = vmax.f32 %v1339_v33, %v1413_v36 }
 0x386   :  { %v1444_v38 = vmax.f32 %v1334_v35, %v1412_v37 }
 0x388   :  { %v2195_v40 = vpop.f32.mrb[70].mxu1  ;;  %2240 = vmatprep.mubr.msk.f32.mxu1 %vm1464_vm1, %v1444_v38 }
 0x389   :  { %v1349_v41 = vadd.f32 %v2195_v40, %v3450_v8  ;;  %v1343_v60 = vpop.f32.mrb[71].mxu1  ;;  %2241 = vmatmul.mubr.msk.f32.gmra.mrb[100].mxu1 %vm1464_vm1, %v1445_v39 }
 0x38a   :  { %v1344_v42 = vadd.f32 %v3450_v8, %v1343_v60 }
 0x38b   :  { %v1415_v43 = vmul.f32 0.01, %v1349_v41 }
 0x38c   :  { %v1414_v44 = vmul.f32 0.01, %v1344_v42 }
 0x38d   :  { %v1447_v46 = vmax.f32 %v1349_v41, %v1415_v43 }
 0x38e   :  { %v1446_v45 = vmax.f32 %v1344_v42, %v1414_v44 }
 0x390   :  { %v2198_v47 = vpop.f32.mrb[72].mxu1  ;;  %2243 = vmatprep.mubr.msk.f32.mxu1 %vm1464_vm1, %v1446_v45 }
 0x391   :  { %v1359_v48 = vadd.f32 %v2198_v47, %v3450_v8  ;;  %v1353_v62 = vpop.f32.mrb[73].mxu1  ;;  %2244 = vmatmul.mubr.msk.f32.gmra.mrb[102].mxu1 %vm1464_vm1, %v1447_v46 }
 0x392   :  { %v1354_v49 = vadd.f32 %v3450_v8, %v1353_v62 }
 0x393   :  { %v1417_v50 = vmul.f32 0.01, %v1359_v48 }
 0x394   :  { %v1416_v51 = vmul.f32 0.01, %v1354_v49 }
 0x395   :  { %v1449_v53 = vmax.f32 %v1359_v48, %v1417_v50 }
 0x396   :  { %v1448_v52 = vmax.f32 %v1354_v49, %v1416_v51 }
 0x398   :  { %v2201_v1 = vpop.f32.mrb[74].mxu1  ;;  %2246 = vmatprep.mubr.msk.f32.mxu1 %vm1464_vm1, %v1448_v52 }
 0x399   :  { %v1369_v54 = vadd.f32 %v2201_v1, %v3450_v8  ;;  %v1363_v55 = vpop.f32.mrb[75].mxu1  ;;  %2247 = vmatmul.mubr.msk.f32.gmra.mrb[104].mxu1 %vm1464_vm1, %v1449_v53 }
 0x39a   :  { %v1364_v56 = vadd.f32 %v3450_v8, %v1363_v55 }
 0x39b   :  { %v1419_v57 = vmul.f32 0.01, %v1369_v54 }
 0x39c   :  { %v1418_v59 = vmul.f32 0.01, %v1364_v56 }
 0x39d   :  { %v1451_v61 = vmax.f32 %v1369_v54, %v1419_v57 }
 0x39e   :  { %v1450_v3 = vmax.f32 %v1364_v56, %v1418_v59 }
 0x3a0   :  { %v2204_v63 = vpop.f32.mrb[76].mxu1  ;;  %2249 = vmatprep.mubr.msk.f32.mxu1 %vm1464_vm1, %v1450_v3 }
 0x3a1   :  { %v1379_v2 = vadd.f32 %v2204_v63, %v3450_v8  ;;  %v1373_v4 = vpop.f32.mrb[77].mxu1  ;;  %2250 = vmatmul.mubr.msk.f32.gmra.mrb[106].mxu1 %vm1464_vm1, %v1451_v61 }
 0x3a2   :  { %v1374_v6 = vadd.f32 %v3450_v8, %v1373_v4 }
 0x3a3   :  { %v1421_v5 = vmul.f32 0.01, %v1379_v2 }
 0x3a4   :  { %v1420_v7 = vmul.f32 0.01, %v1374_v6 }
 0x3a5   :  { %v1453_v11 = vmax.f32 %v1379_v2, %v1421_v5 }
 0x3a6   :  { %v1452_v9 = vmax.f32 %v1374_v6, %v1420_v7 }
 0x3a8   :  { %v2207_v12 = vpop.f32.mrb[78].mxu1  ;;  %2252 = vmatprep.mubr.msk.f32.mxu1 %vm1464_vm1, %v1452_v9 }
 0x3a9   :  { %v1389_v13 = vadd.f32 %v2207_v12, %v3450_v8  ;;  %v1383_v14 = vpop.f32.mrb[79].mxu1  ;;  %2253 = vmatmul.mubr.msk.f32.gmra.mrb[108].mxu1 %vm1464_vm1, %v1453_v11 }
 0x3aa   :  { %v1384_v15 = vadd.f32 %v3450_v8, %v1383_v14 }
 0x3ab   :  { %v1423_v16 = vmul.f32 0.01, %v1389_v13 }
 0x3ac   :  { %v1422_v10 = vmul.f32 0.01, %v1384_v15 }
 0x3ad   :  { %v1455_v18 = vmax.f32 %v1389_v13, %v1423_v16 }
 0x3ae   :  { %v1454_v17 = vmax.f32 %v1384_v15, %v1422_v10 }
 0x3b0   :  { %2255 = vmatprep.mubr.msk.f32.mxu1 %vm1464_vm1, %v1454_v17 }
 0x3b1   :  { %2256 = vmatmul.mubr.msk.f32.gmra.mrb[110].mxu1 %vm1464_vm1, %v1455_v18 }
 0x40c   :  { %v2212_v0 = vpop.f32.mrb[80].mxu1 }
 0x40d   :  { %v1633_v20 = vadd.f32 %v2212_v0, %v3519_v19  ;;  %v1627_v21 = vpop.f32.mrb[81].mxu1 }
 0x40e   :  { %v1628_v22 = vadd.f32 %v3519_v19, %v1627_v21 }
 0x40f   :  { %v1788_v23 = vmul.f32 1.442695, %v1633_v20 }
 0x410   :  { %v1786_v24 = vmul.f32 1.442695, %v1628_v22 }
 0x411   :  { %2515 = vpow2.f32 %v1788_v23 }
 0x412   :  { %2517 = vpow2.f32 %v1786_v24 }
 0x414   :  { %v2215_v8 = vpop.f32.mrb[82].mxu1 }
 0x415   :  { %v1643_v25 = vadd.f32 %v2215_v8, %v3519_v19  ;;  %v1637_v26 = vpop.f32.mrb[83].mxu1 }
 0x416   :  { %v1638_v27 = vadd.f32 %v3519_v19, %v1637_v26 }
 0x417   :  { %v1792_v28 = vmul.f32 1.442695, %v1643_v25 }
 0x418   :  { %v1790_v29 = vmul.f32 1.442695, %v1638_v27 }
 0x419   :  { %2519 = vpow2.f32 %v1792_v28 }
 0x41a   :  { %2521 = vpow2.f32 %v1790_v29 }
 0x41b   :  { %v2516_v58 = vpop.eup %2515 }
 0x41c   :  { %v2518_v30 = vpop.eup %2517  ;;  %1852 = vst.msk [vmem:[%s3690_s9 + $0x8] sm:$0xff] %vm1850_vm2, %v2516_v58  ;;  %v2218_v31 = vpop.f32.mrb[84].mxu1 }
 0x41d   :  { %1851 = vst.msk [vmem:[%s3690_s9] sm:$0xff] %vm1850_vm2, %v2518_v30  ;;  %v1653_v32 = vadd.f32 %v2218_v31, %v3519_v19  ;;  %v1647_v33 = vpop.f32.mrb[85].mxu1 }
 0x41e   :  { %v1648_v34 = vadd.f32 %v3519_v19, %v1647_v33 }
 0x41f   :  { %v1796_v35 = vmul.f32 1.442695, %v1653_v32 }
 0x420   :  { %v1794_v36 = vmul.f32 1.442695, %v1648_v34 }
 0x421   :  { %2523 = vpow2.f32 %v1796_v35 }
 0x422   :  { %2525 = vpow2.f32 %v1794_v36 }
 0x423   :  { %v2520_v37 = vpop.eup %2519 }
 0x424   :  { %v2522_v38 = vpop.eup %2521  ;;  %1854 = vst.msk [vmem:[%s3690_s9 + $0x18] sm:$0xff] %vm1850_vm2, %v2520_v37  ;;  %v2221_v39 = vpop.f32.mrb[86].mxu1 }
 0x425   :  { %1853 = vst.msk [vmem:[%s3690_s9 + $0x10] sm:$0xff] %vm1850_vm2, %v2522_v38  ;;  %v1663_v40 = vadd.f32 %v2221_v39, %v3519_v19  ;;  %v1657_v41 = vpop.f32.mrb[87].mxu1 }
 0x426   :  { %v1658_v60 = vadd.f32 %v3519_v19, %v1657_v41 }
 0x427   :  { %v1800_v42 = vmul.f32 1.442695, %v1663_v40 }
 0x428   :  { %v1798_v43 = vmul.f32 1.442695, %v1658_v60 }
 0x429   :  { %2527 = vpow2.f32 %v1800_v42 }
 0x42a   :  { %2529 = vpow2.f32 %v1798_v43 }
 0x42b   :  { %v2524_v44 = vpop.eup %2523 }
 0x42c   :  { %v2526_v45 = vpop.eup %2525  ;;  %1856 = vst.msk [vmem:[%s3690_s9 + $0x28] sm:$0xff] %vm1850_vm2, %v2524_v44  ;;  %v2224_v46 = vpop.f32.mrb[88].mxu1 }
 0x42d   :  { %1855 = vst.msk [vmem:[%s3690_s9 + $0x20] sm:$0xff] %vm1850_vm2, %v2526_v45  ;;  %v1673_v47 = vadd.f32 %v2224_v46, %v3519_v19  ;;  %v1667_v48 = vpop.f32.mrb[89].mxu1 }
 0x42e   :  { %v1668_v62 = vadd.f32 %v3519_v19, %v1667_v48 }
 0x42f   :  { %v1804_v49 = vmul.f32 1.442695, %v1673_v47 }
 0x430   :  { %v1802_v50 = vmul.f32 1.442695, %v1668_v62 }
 0x431   :  { %2531 = vpow2.f32 %v1804_v49 }
 0x432   :  { %2533 = vpow2.f32 %v1802_v50 }
 0x433   :  { %v2528_v51 = vpop.eup %2527 }
 0x434   :  { %v2530_v52 = vpop.eup %2529  ;;  %1858 = vst.msk [vmem:[%s3690_s9 + $0x38] sm:$0xff] %vm1850_vm2, %v2528_v51  ;;  %v2227_v53 = vpop.f32.mrb[90].mxu1 }
 0x435   :  { %1857 = vst.msk [vmem:[%s3690_s9 + $0x30] sm:$0xff] %vm1850_vm2, %v2530_v52  ;;  %v1683_v1 = vadd.f32 %v2227_v53, %v3519_v19  ;;  %v1677_v54 = vpop.f32.mrb[91].mxu1 }
 0x436   :  { %v1678_v55 = vadd.f32 %v3519_v19, %v1677_v54 }
 0x437   :  { %v1808_v56 = vmul.f32 1.442695, %v1683_v1 }
 0x438   :  { %v1806_v57 = vmul.f32 1.442695, %v1678_v55 }
 0x439   :  { %2535 = vpow2.f32 %v1808_v56 }
 0x43a   :  { %2537 = vpow2.f32 %v1806_v57 }
 0x43b   :  { %v2532_v59 = vpop.eup %2531 }
 0x43c   :  { %v2534_v3 = vpop.eup %2533  ;;  %1860 = vst.msk [vmem:[%s3690_s9 + $0x48] sm:$0xff] %vm1850_vm2, %v2532_v59  ;;  %v2230_v61 = vpop.f32.mrb[92].mxu1 }
 0x43d   :  { %1859 = vst.msk [vmem:[%s3690_s9 + $0x40] sm:$0xff] %vm1850_vm2, %v2534_v3  ;;  %v1693_v63 = vadd.f32 %v2230_v61, %v3519_v19  ;;  %v1687_v2 = vpop.f32.mrb[93].mxu1 }
 0x43e   :  { %v1688_v4 = vadd.f32 %v3519_v19, %v1687_v2 }
 0x43f   :  { %v1812_v6 = vmul.f32 1.442695, %v1693_v63 }
 0x440   :  { %v1810_v5 = vmul.f32 1.442695, %v1688_v4 }
 0x441   :  { %2539 = vpow2.f32 %v1812_v6 }
 0x442   :  { %2541 = vpow2.f32 %v1810_v5 }
 0x443   :  { %v2536_v7 = vpop.eup %2535 }
 0x444   :  { %v2538_v9 = vpop.eup %2537  ;;  %1862 = vst.msk [vmem:[%s3690_s9 + $0x58] sm:$0xff] %vm1850_vm2, %v2536_v7  ;;  %v2233_v11 = vpop.f32.mrb[94].mxu1 }
 0x445   :  { %1861 = vst.msk [vmem:[%s3690_s9 + $0x50] sm:$0xff] %vm1850_vm2, %v2538_v9  ;;  %v1703_v12 = vadd.f32 %v2233_v11, %v3519_v19  ;;  %v1697_v13 = vpop.f32.mrb[95].mxu1 }
 0x446   :  { %v1698_v14 = vadd.f32 %v3519_v19, %v1697_v13 }
 0x447   :  { %v1816_v15 = vmul.f32 1.442695, %v1703_v12 }
 0x448   :  { %v1814_v16 = vmul.f32 1.442695, %v1698_v14 }
 0x449   :  { %2543 = vpow2.f32 %v1816_v15 }
 0x44a   :  { %2545 = vpow2.f32 %v1814_v16 }
 0x44b   :  { %v2540_v10 = vpop.eup %2539 }
 0x44c   :  { %v2542_v17 = vpop.eup %2541  ;;  %1864 = vst.msk [vmem:[%s3690_s9 + $0x68] sm:$0xff] %vm1850_vm2, %v2540_v10  ;;  %v2236_v18 = vpop.f32.mrb[96].mxu1 }
 0x44d   :  { %1863 = vst.msk [vmem:[%s3690_s9 + $0x60] sm:$0xff] %vm1850_vm2, %v2542_v17  ;;  %v1713_v0 = vadd.f32 %v2236_v18, %v3519_v19  ;;  %v1707_v20 = vpop.f32.mrb[97].mxu1 }
 0x44e   :  { %v1708_v21 = vadd.f32 %v3519_v19, %v1707_v20 }
 0x44f   :  { %v1820_v22 = vmul.f32 1.442695, %v1713_v0 }
 0x450   :  { %v1818_v23 = vmul.f32 1.442695, %v1708_v21 }
 0x451   :  { %2547 = vpow2.f32 %v1820_v22 }
 0x452   :  { %2549 = vpow2.f32 %v1818_v23 }
 0x453   :  { %v2544_v24 = vpop.eup %2543 }
 0x454   :  { %v2546_v8 = vpop.eup %2545  ;;  %1866 = vst.msk [vmem:[%s3690_s9 + $0x78] sm:$0xff] %vm1850_vm2, %v2544_v24  ;;  %v2239_v25 = vpop.f32.mrb[98].mxu1 }
 0x455   :  { %1865 = vst.msk [vmem:[%s3690_s9 + $0x70] sm:$0xff] %vm1850_vm2, %v2546_v8  ;;  %v1723_v26 = vadd.f32 %v2239_v25, %v3519_v19  ;;  %v1717_v27 = vpop.f32.mrb[99].mxu1 }
 0x456   :  { %v1718_v28 = vadd.f32 %v3519_v19, %v1717_v27 }
 0x457   :  { %v1824_v29 = vmul.f32 1.442695, %v1723_v26 }
 0x458   :  { %v1822_v58 = vmul.f32 1.442695, %v1718_v28 }
 0x459   :  { %2551 = vpow2.f32 %v1824_v29 }
 0x45a   :  { %2553 = vpow2.f32 %v1822_v58 }
 0x45b   :  { %v2548_v30 = vpop.eup %2547 }
 0x45c   :  { %v2550_v31 = vpop.eup %2549  ;;  %1868 = vst.msk [vmem:[%s3690_s9 + $0x88] sm:$0xff] %vm1850_vm2, %v2548_v30  ;;  %v2242_v32 = vpop.f32.mrb[100].mxu1 }
 0x45d   :  { %1867 = vst.msk [vmem:[%s3690_s9 + $0x80] sm:$0xff] %vm1850_vm2, %v2550_v31  ;;  %v1733_v33 = vadd.f32 %v2242_v32, %v3519_v19  ;;  %v1727_v34 = vpop.f32.mrb[101].mxu1 }
 0x45e   :  { %v1728_v35 = vadd.f32 %v3519_v19, %v1727_v34 }
 0x45f   :  { %v1828_v36 = vmul.f32 1.442695, %v1733_v33 }
 0x460   :  { %v1826_v37 = vmul.f32 1.442695, %v1728_v35 }
 0x461   :  { %2555 = vpow2.f32 %v1828_v36 }
 0x462   :  { %2557 = vpow2.f32 %v1826_v37 }
 0x463   :  { %v2552_v38 = vpop.eup %2551 }
 0x464   :  { %v2554_v39 = vpop.eup %2553  ;;  %1870 = vst.msk [vmem:[%s3690_s9 + $0x98] sm:$0xff] %vm1850_vm2, %v2552_v38  ;;  %v2245_v40 = vpop.f32.mrb[102].mxu1 }
 0x465   :  { %1869 = vst.msk [vmem:[%s3690_s9 + $0x90] sm:$0xff] %vm1850_vm2, %v2554_v39  ;;  %v1743_v41 = vadd.f32 %v2245_v40, %v3519_v19  ;;  %v1737_v60 = vpop.f32.mrb[103].mxu1 }
 0x466   :  { %v1738_v42 = vadd.f32 %v3519_v19, %v1737_v60 }
 0x467   :  { %v1832_v43 = vmul.f32 1.442695, %v1743_v41 }
 0x468   :  { %v1830_v44 = vmul.f32 1.442695, %v1738_v42 }
 0x469   :  { %2559 = vpow2.f32 %v1832_v43 }
 0x46a   :  { %2561 = vpow2.f32 %v1830_v44 }
 0x46b   :  { %v2556_v45 = vpop.eup %2555 }
 0x46c   :  { %v2558_v46 = vpop.eup %2557  ;;  %1872 = vst.msk [vmem:[%s3690_s9 + $0xa8] sm:$0xff] %vm1850_vm2, %v2556_v45  ;;  %v2248_v47 = vpop.f32.mrb[104].mxu1 }
 0x46d   :  { %1871 = vst.msk [vmem:[%s3690_s9 + $0xa0] sm:$0xff] %vm1850_vm2, %v2558_v46  ;;  %v1753_v48 = vadd.f32 %v2248_v47, %v3519_v19  ;;  %v1747_v62 = vpop.f32.mrb[105].mxu1 }
 0x46e   :  { %v1748_v49 = vadd.f32 %v3519_v19, %v1747_v62 }
 0x46f   :  { %v1836_v50 = vmul.f32 1.442695, %v1753_v48 }
 0x470   :  { %v1834_v51 = vmul.f32 1.442695, %v1748_v49 }
 0x471   :  { %2563 = vpow2.f32 %v1836_v50 }
 0x472   :  { %2565 = vpow2.f32 %v1834_v51 }
 0x473   :  { %v2560_v52 = vpop.eup %2559 }
 0x474   :  { %v2562_v53 = vpop.eup %2561  ;;  %1874 = vst.msk [vmem:[%s3690_s9 + $0xb8] sm:$0xff] %vm1850_vm2, %v2560_v52  ;;  %v2251_v1 = vpop.f32.mrb[106].mxu1 }
 0x475   :  { %1873 = vst.msk [vmem:[%s3690_s9 + $0xb0] sm:$0xff] %vm1850_vm2, %v2562_v53  ;;  %v1763_v54 = vadd.f32 %v2251_v1, %v3519_v19  ;;  %v1757_v55 = vpop.f32.mrb[107].mxu1 }
 0x476   :  { %v1758_v56 = vadd.f32 %v3519_v19, %v1757_v55 }
 0x477   :  { %v1840_v57 = vmul.f32 1.442695, %v1763_v54 }
 0x478   :  { %v1838_v59 = vmul.f32 1.442695, %v1758_v56 }
 0x479   :  { %2567 = vpow2.f32 %v1840_v57 }
 0x47a   :  { %2569 = vpow2.f32 %v1838_v59 }
 0x47b   :  { %v2564_v3 = vpop.eup %2563 }
 0x47c   :  { %v2566_v61 = vpop.eup %2565  ;;  %1876 = vst.msk [vmem:[%s3690_s9 + $0xc8] sm:$0xff] %vm1850_vm2, %v2564_v3  ;;  %v2254_v63 = vpop.f32.mrb[108].mxu1 }
 0x47d   :  { %1875 = vst.msk [vmem:[%s3690_s9 + $0xc0] sm:$0xff] %vm1850_vm2, %v2566_v61  ;;  %v1773_v2 = vadd.f32 %v2254_v63, %v3519_v19  ;;  %v1767_v4 = vpop.f32.mrb[109].mxu1 }
 0x47e   :  { %v1768_v6 = vadd.f32 %v3519_v19, %v1767_v4 }
 0x47f   :  { %v1844_v5 = vmul.f32 1.442695, %v1773_v2 }
 0x480   :  { %v1842_v7 = vmul.f32 1.442695, %v1768_v6 }
 0x481   :  { %2571 = vpow2.f32 %v1844_v5 }
 0x482   :  { %2573 = vpow2.f32 %v1842_v7 }
 0x483   :  { %v2568_v9 = vpop.eup %2567 }
 0x484   :  { %v2570_v11 = vpop.eup %2569  ;;  %1878 = vst.msk [vmem:[%s3690_s9 + $0xd8] sm:$0xff] %vm1850_vm2, %v2568_v9  ;;  %v2257_v12 = vpop.f32.mrb[110].mxu1 }
 0x485   :  { %1877 = vst.msk [vmem:[%s3690_s9 + $0xd0] sm:$0xff] %vm1850_vm2, %v2570_v11  ;;  %v1783_v13 = vadd.f32 %v2257_v12, %v3519_v19  ;;  %v1777_v14 = vpop.f32.mrb[111].mxu1 }
 0x486   :  { %v1778_v15 = vadd.f32 %v3519_v19, %v1777_v14 }
 0x487   :  { %v1848_v16 = vmul.f32 1.442695, %v1783_v13 }
 0x488   :  { %v1846_v10 = vmul.f32 1.442695, %v1778_v15 }
 0x489   :  { %2575 = vpow2.f32 %v1848_v16 }
 0x48a   :  { %2577 = vpow2.f32 %v1846_v10 }
 0x48b   :  { %v2572_v17 = vpop.eup %2571 }
 0x48c   :  { %v2574_v18 = vpop.eup %2573  ;;  %1880 = vst.msk [vmem:[%s3690_s9 + $0xe8] sm:$0xff] %vm1850_vm2, %v2572_v17 }
 0x48d   :  { %1879 = vst.msk [vmem:[%s3690_s9 + $0xe0] sm:$0xff] %vm1850_vm2, %v2574_v18 }
 0x493   :  { %v2576_v0 = vpop.eup %2575 }
 0x494   :  { %v2578_v20 = vpop.eup %2577  ;;  %1882 = vst.msk [vmem:[%s3690_s9 + $0xf8] sm:$0xff] %vm1850_vm2, %v2576_v0 }
 0x495   :  { %1881 = vst.msk [vmem:[%s3690_s9 + $0xf0] sm:$0xff] %vm1850_vm2, %v2578_v20 }

</bundles_post_ra>
